<compile_context>
chip_gen: v5e
topology: v5e:2x2
jax: 0.10.0
libtpu: 0.0.40
codegen_flags: <defaults>
</compile_context>

<pallas_src>
import dataclasses
from functools import partial

import jax
import jax.numpy as jnp
import numpy as np
from jax.experimental import pallas as pl
from jax.experimental.pallas import tpu as pltpu


@dataclasses.dataclass
class CRNNConfig:
    n_mels: int = 16
    cnn_out_channels: int = 4
    kernel_size: tuple = (4, 4)
    stride: tuple = (2, 2)
    hidden_size: int = 32
    gru_num_layers: int = 2
    bidirectional: bool = False  # must be False (see note above)
    num_classes: int = 4


# ----------------------------------------------------------------------------
# Fused Pallas kernel (conv/ih-proj matmul + GRU recurrence + attention + classifier)
# ----------------------------------------------------------------------------
def make_crnn_kernel(B, To, H, L, num_classes):
    """Builds the fused kernel for fixed (batch, time, hidden, layers, classes)."""

    def kernel(*refs):
        # ---- unpack refs -----------------------------------------------------
        patches_ref = refs[0]                      # (To*B, P) time-major rows t*B+b
        layer_p = []
        for l in range(L):
            base = 1 + 4 * l
            layer_p.append((refs[base],            # w_in  (D_l, 3H)  (layer0: conv-fused)
                            refs[base + 1],        # b_in  (1, 3H)    (b_hr/b_hz folded in)
                            refs[base + 2],        # w_hh  (H, 3H)
                            refs[base + 3]))       # b_hn  (1, H)
        a0 = 1 + 4 * L
        w1_ref, b1_ref, w2r_ref, b2_ref, wc_ref, bc_ref, out_ref = refs[a0:a0 + 7]

        f32 = jnp.float32

        # ---- layer 0 input projection: conv folded in, one lane-dense matmul --
        w_in0, b_in0, _, _ = layer_p[0]
        xp0 = jnp.dot(patches_ref[...], w_in0[...],
                      preferred_element_type=f32) + b_in0[...]        # (To*B, 3H)

        # ---- stacked unidirectional GRU (fully unrolled over time) ------------
        hs = None
        for l in range(L):
            w_in_ref, b_in_ref, w_hh_ref, b_hn_ref = layer_p[l]
            w_hh = w_hh_ref[...]                                      # (H, 3H)
            b_hn = b_hn_ref[...]                                      # (1, H)
            if l > 0:
                w_in = w_in_ref[...]
                b_in = b_in_ref[...]
            h = jnp.zeros((B, H), f32)
            new_hs = []
            for t in range(To):
                if l == 0:
                    xg = xp0[t * B:(t + 1) * B, :]                    # (B, 3H) static slice
                else:
                    xg = jnp.dot(hs[t], w_in,
                                 preferred_element_type=f32) + b_in   # (B, 3H)
                hg = jnp.dot(h, w_hh, preferred_element_type=f32)     # single fused gate matmul
                a = xg + hg
                r = jax.nn.sigmoid(a[:, :H])
                z = jax.nn.sigmoid(a[:, H:2 * H])
                n = jnp.tanh(xg[:, 2 * H:] + r * (hg[:, 2 * H:] + b_hn))
                h = (1.0 - z) * n + z * h
                new_hs.append(h)
            hs = new_hs

        # ---- attention: energy -> softmax over time -> context ----------------
        w1 = w1_ref[...]
        b1 = b1_ref[...]
        w2r = w2r_ref[...]                                            # (1, H) row of att_w2
        b2 = b2_ref[...]                                              # (1, 1)
        en = []
        for t in range(To):
            e_t = jnp.tanh(jnp.dot(hs[t], w1, preferred_element_type=f32) + b1)
            # (H -> 1) projection on the VPU (lane reduce), not an N=1 MXU matmul
            en.append(jnp.sum(e_t * w2r, axis=-1, keepdims=True) + b2)  # (B, 1)

        m = en[0]
        for t in range(1, To):
            m = jnp.maximum(m, en[t])
        ps = [jnp.exp(en[t] - m) for t in range(To)]
        denom = ps[0]
        for t in range(1, To):
            denom = denom + ps[t]
        ctx = ps[0] * hs[0]
        for t in range(1, To):
            ctx = ctx + ps[t] * hs[t]
        ctx = ctx / denom                                             # (B, H)

        # ---- classifier --------------------------------------------------------
        out_ref[...] = jnp.dot(ctx, wc_ref[...],
                               preferred_element_type=f32) + bc_ref[...]

    return kernel


# ----------------------------------------------------------------------------
# Host-side glue: im2col, weight folding, single pallas_call
# ----------------------------------------------------------------------------
def _im2col(x, kh, kw, sh, sw):
    B, n_mels, T = x.shape
    Fo = (n_mels - kh) // sh + 1
    To = (T - kw) // sw + 1
    cols = [
        x[:, i:i + (Fo - 1) * sh + 1:sh, j:j + (To - 1) * sw + 1:sw]
        for i in range(kh) for j in range(kw)
    ]
    return jnp.stack(cols, axis=-1), Fo, To  # (B, Fo, To, kh*kw), k = i*kw + j


def crnn_forward(x, params, cfg):
    B = x.shape[0]
    kh, kw = cfg.kernel_size
    sh, sw = cfg.stride
    H, C = cfg.hidden_size, cfg.cnn_out_channels
    L, nc = cfg.gru_num_layers, cfg.num_classes
    K = kh * kw
    H3 = 3 * H

    patches, Fo, To = _im2col(x, kh, kw, sh, sw)                      # (B, Fo, To, K)
    P = Fo * K
    # time-major flat patches: row t*B + b, feature f*K + k
    patches_flat = jnp.transpose(patches, (2, 0, 1, 3)).reshape(To * B, P)

    # ---- fold Conv2d into the layer-0 GRU input projection ----
    # feats[b,t,c*Fo+f] = sum_k patches[b,f,t,k]*conv_w[k,c] + conv_b[c]
    # => xproj0 = patches_flat @ W_comb + b_comb
    w_ih0 = params["w_ih_0"].reshape(C, Fo, H3)                       # [c, f, n]
    w_in0 = jnp.einsum("kc,cfn->fkn", params["conv_w"], w_ih0).reshape(P, H3)
    b_in0 = jnp.einsum("c,cfn->n", params["conv_b"][0], w_ih0)[None, :] + params["b_ih_0"]
    # fold b_hr, b_hz into the input bias; b_hn must stay inside r*(...)
    b_in0 = b_in0.at[:, :2 * H].add(params["b_hh_0"][:, :2 * H])
    b_hn0 = params["b_hh_0"][:, 2 * H:]

    args = [patches_flat, w_in0, b_in0, params["w_hh_0"], b_hn0]
    for l in range(1, L):
        b_in = params[f"b_ih_{l}"].at[:, :2 * H].add(params[f"b_hh_{l}"][:, :2 * H])
        args += [params[f"w_ih_{l}"], b_in,
                 params[f"w_hh_{l}"], params[f"b_hh_{l}"][:, 2 * H:]]
    args += [params["att_w1"], params["att_b1"],
             params["att_w2"].T, params["att_b2"],
             params["cls_w"], params["cls_b"]]

    vmem = pl.BlockSpec(memory_space=pltpu.MemorySpace.VMEM)
    out = pl.pallas_call(
        make_crnn_kernel(B, To, H, L, nc),
        out_shape=jax.ShapeDtypeStruct((B, nc), jnp.float32),
        in_specs=[vmem] * len(args),
        out_specs=vmem,
    )(*args)
    return out


# ----------------------------------------------------------------------------
# Pure-JAX reference (unfused math, identical semantics) for numerical sanity
# ----------------------------------------------------------------------------
def crnn_reference(x, params, cfg):
    B = x.shape[0]
    kh, kw = cfg.kernel_size
    sh, sw = cfg.stride
    H, C = cfg.hidden_size, cfg.cnn_out_channels
    patches, Fo, To = _im2col(x, kh, kw, sh, sw)
    conv = patches.reshape(B * Fo * To, kh * kw) @ params["conv_w"] + params["conv_b"]
    feats = jnp.transpose(conv.reshape(B, Fo, To, C), (0, 2, 3, 1)).reshape(B, To, C * Fo)
    layer_in = feats
    for l in range(cfg.gru_num_layers):
        xproj = layer_in @ params[f"w_ih_{l}"] + params[f"b_ih_{l}"]
        whh, bhh = params[f"w_hh_{l}"], params[f"b_hh_{l}"]
        h = jnp.zeros((B, H), jnp.float32)
        outs = []
        for t in range(To):
            xp = xproj[:, t, :]
            hp = h @ whh + bhh
            r = jax.nn.sigmoid(xp[:, :H] + hp[:, :H])
            z = jax.nn.sigmoid(xp[:, H:2 * H] + hp[:, H:2 * H])
            n = jnp.tanh(xp[:, 2 * H:] + r * hp[:, 2 * H:])
            h = (1.0 - z) * n + z * h
            outs.append(h)
        layer_in = jnp.stack(outs, axis=1)
    g = layer_in
    e = jnp.tanh(g @ params["att_w1"] + params["att_b1"])
    en = e @ params["att_w2"] + params["att_b2"]
    alpha = jax.nn.softmax(en, axis=-2)
    ctx = jnp.sum(g * alpha, axis=-2)
    return ctx @ params["cls_w"] + params["cls_b"]


def init_params(cfg, key):
    kh, kw = cfg.kernel_size
    H, C = cfg.hidden_size, cfg.cnn_out_channels
    Fo = (cfg.n_mels - kh) // cfg.stride[0] + 1
    keys = iter(jax.random.split(key, 64))

    def nrm(shape, scale=0.1):
        return scale * jax.random.normal(next(keys), shape, dtype=jnp.float32)

    p = {
        "conv_w": nrm((kh * kw, C)),   # Conv2d(1, C, (kh, kw)) weight, im2col layout
        "conv_b": nrm((1, C)),
        "att_w1": nrm((H, H)), "att_b1": nrm((1, H)),
        "att_w2": nrm((H, 1)), "att_b2": nrm((1, 1)),
        "cls_w": nrm((H, cfg.num_classes)), "cls_b": nrm((1, cfg.num_classes)),
    }
    D = Fo * C
    for l in range(cfg.gru_num_layers):
        p[f"w_ih_{l}"] = nrm((D, 3 * H))   # transposed PyTorch weight_ih_l{l}
        p[f"b_ih_{l}"] = nrm((1, 3 * H))
        p[f"w_hh_{l}"] = nrm((H, 3 * H))   # transposed PyTorch weight_hh_l{l}
        p[f"b_hh_{l}"] = nrm((1, 3 * H))
        D = H
    return p


if __name__ == "__main__":
    cfg = CRNNConfig()
    assert not cfg.bidirectional  # TODO(synk): bidirectional GRU not implemented (module would be shape-inconsistent anyway)

    key = jax.random.PRNGKey(0)
    kx, kp = jax.random.split(key)
    x = jax.random.normal(kx, (2, cfg.n_mels, 16), dtype=jnp.float32)  # (B, n_mels, T)
    params = init_params(cfg, kp)

    fwd = jax.jit(partial(crnn_forward, cfg=cfg))
    out = jax.block_until_ready(fwd(x, params))

    assert out.shape == (2, cfg.num_classes)
    assert bool(jnp.all(jnp.isfinite(out)))
    ref = crnn_reference(x, params, cfg)
    np.testing.assert_allclose(np.asarray(out), np.asarray(ref), atol=1e-4, rtol=1e-4)
    print("KERNEL_OK")
</pallas_src>

<mosaic_0001>
module attributes {stable_mosaic.version = 11 : i64} {
  func.func @kernel(%arg0: memref<14x112xf32, #tpu.memory_space<vmem>>, %arg1: memref<112x96xf32, #tpu.memory_space<vmem>>, %arg2: memref<1x96xf32, #tpu.memory_space<vmem>>, %arg3: memref<32x96xf32, #tpu.memory_space<vmem>>, %arg4: memref<1x32xf32, #tpu.memory_space<vmem>>, %arg5: memref<32x96xf32, #tpu.memory_space<vmem>>, %arg6: memref<1x96xf32, #tpu.memory_space<vmem>>, %arg7: memref<32x96xf32, #tpu.memory_space<vmem>>, %arg8: memref<1x32xf32, #tpu.memory_space<vmem>>, %arg9: memref<32x32xf32, #tpu.memory_space<vmem>>, %arg10: memref<1x32xf32, #tpu.memory_space<vmem>>, %arg11: memref<1x32xf32, #tpu.memory_space<vmem>>, %arg12: memref<1x1xf32, #tpu.memory_space<vmem>>, %arg13: memref<32x4xf32, #tpu.memory_space<vmem>>, %arg14: memref<1x4xf32, #tpu.memory_space<vmem>>, %arg15: memref<2x4xf32, #tpu.memory_space<vmem>>) attributes {dimension_semantics = [], scalar_prefetch = 0 : i64, scratch_operands = 0 : i64, tpu.core_type = #tpu.core_type<tc>} {
    %c0 = arith.constant 0 : index
    %c0_0 = arith.constant 0 : index
    %0 = vector.load %arg0[%c0, %c0_0] : memref<14x112xf32, #tpu.memory_space<vmem>>, vector<14x112xf32>
    %c0_1 = arith.constant 0 : index
    %c0_2 = arith.constant 0 : index
    %1 = vector.load %arg1[%c0_1, %c0_2] : memref<112x96xf32, #tpu.memory_space<vmem>>, vector<112x96xf32>
    %cst = arith.constant dense<0.000000e+00> : vector<14x96xf32>
    %2 = tpu.matmul %0, %1, %cst {dimension_numbers = #tpu.dot_dimension_numbers<[1], [0], [0], [1], [0, 0, 1, 1], [], []>} : vector<14x112xf32>, vector<112x96xf32>, vector<14x96xf32> -> vector<14x96xf32>
    %c0_3 = arith.constant 0 : index
    %c0_4 = arith.constant 0 : index
    %3 = vector.load %arg2[%c0_3, %c0_4] : memref<1x96xf32, #tpu.memory_space<vmem>>, vector<1x96xf32>
    %4 = vector.broadcast %3 : vector<1x96xf32> to vector<14x96xf32>
    %5 = arith.addf %2, %4 : vector<14x96xf32>
    %c0_5 = arith.constant 0 : index
    %c0_6 = arith.constant 0 : index
    %6 = vector.load %arg3[%c0_5, %c0_6] : memref<32x96xf32, #tpu.memory_space<vmem>>, vector<32x96xf32>
    %c0_7 = arith.constant 0 : index
    %c0_8 = arith.constant 0 : index
    %7 = vector.load %arg4[%c0_7, %c0_8] : memref<1x32xf32, #tpu.memory_space<vmem>>, vector<1x32xf32>
    %cst_9 = arith.constant 0.000000e+00 : f32
    %8 = vector.broadcast %cst_9 : f32 to vector<2x32xf32>
    %9 = vector.extract_strided_slice %5 {offsets = [0, 0], sizes = [2, 96], strides = [1, 1]} : vector<14x96xf32> to vector<2x96xf32>
    %cst_10 = arith.constant dense<0.000000e+00> : vector<2x96xf32>
    %10 = tpu.matmul %8, %6, %cst_10 {dimension_numbers = #tpu.dot_dimension_numbers<[1], [0], [0], [1], [0, 0, 1, 1], [], []>} : vector<2x32xf32>, vector<32x96xf32>, vector<2x96xf32> -> vector<2x96xf32>
    %11 = arith.addf %9, %10 : vector<2x96xf32>
    %12 = vector.extract_strided_slice %11 {offsets = [0, 0], sizes = [2, 32], strides = [1, 1]} : vector<2x96xf32> to vector<2x32xf32>
    %13 = arith.negf %12 : vector<2x32xf32>
    %14 = math.exp %13 : vector<2x32xf32>
    %cst_11 = arith.constant 1.000000e+00 : f32
    %15 = vector.broadcast %cst_11 : f32 to vector<2x32xf32>
    %16 = arith.addf %15, %14 : vector<2x32xf32>
    %17 = arith.divf %15, %16 : vector<2x32xf32>
    %18 = vector.extract_strided_slice %11 {offsets = [0, 32], sizes = [2, 32], strides = [1, 1]} : vector<2x96xf32> to vector<2x32xf32>
    %19 = arith.negf %18 : vector<2x32xf32>
    %20 = math.exp %19 : vector<2x32xf32>
    %cst_12 = arith.constant 1.000000e+00 : f32
    %21 = vector.broadcast %cst_12 : f32 to vector<2x32xf32>
    %22 = arith.addf %21, %20 : vector<2x32xf32>
    %23 = arith.divf %21, %22 : vector<2x32xf32>
    %24 = vector.extract_strided_slice %9 {offsets = [0, 64], sizes = [2, 32], strides = [1, 1]} : vector<2x96xf32> to vector<2x32xf32>
    %25 = vector.extract_strided_slice %10 {offsets = [0, 64], sizes = [2, 32], strides = [1, 1]} : vector<2x96xf32> to vector<2x32xf32>
    %26 = vector.broadcast %7 : vector<1x32xf32> to vector<2x32xf32>
    %27 = arith.addf %25, %26 : vector<2x32xf32>
    %28 = arith.mulf %17, %27 : vector<2x32xf32>
    %29 = arith.addf %24, %28 : vector<2x32xf32>
    %30 = math.tanh %29 : vector<2x32xf32>
    %cst_13 = arith.constant 1.000000e+00 : f32
    %31 = vector.broadcast %cst_13 : f32 to vector<2x32xf32>
    %32 = arith.subf %31, %23 : vector<2x32xf32>
    %33 = arith.mulf %32, %30 : vector<2x32xf32>
    %34 = arith.mulf %23, %8 : vector<2x32xf32>
    %35 = arith.addf %33, %34 : vector<2x32xf32>
    %36 = vector.extract_strided_slice %5 {offsets = [2, 0], sizes = [2, 96], strides = [1, 1]} : vector<14x96xf32> to vector<2x96xf32>
    %cst_14 = arith.constant dense<0.000000e+00> : vector<2x96xf32>
    %37 = tpu.matmul %35, %6, %cst_14 {dimension_numbers = #tpu.dot_dimension_numbers<[1], [0], [0], [1], [0, 0, 1, 1], [], []>} : vector<2x32xf32>, vector<32x96xf32>, vector<2x96xf32> -> vector<2x96xf32>
    %38 = arith.addf %36, %37 : vector<2x96xf32>
    %39 = vector.extract_strided_slice %38 {offsets = [0, 0], sizes = [2, 32], strides = [1, 1]} : vector<2x96xf32> to vector<2x32xf32>
    %40 = arith.negf %39 : vector<2x32xf32>
    %41 = math.exp %40 : vector<2x32xf32>
    %cst_15 = arith.constant 1.000000e+00 : f32
    %42 = vector.broadcast %cst_15 : f32 to vector<2x32xf32>
    %43 = arith.addf %42, %41 : vector<2x32xf32>
    %44 = arith.divf %42, %43 : vector<2x32xf32>
    %45 = vector.extract_strided_slice %38 {offsets = [0, 32], sizes = [2, 32], strides = [1, 1]} : vector<2x96xf32> to vector<2x32xf32>
    %46 = arith.negf %45 : vector<2x32xf32>
    %47 = math.exp %46 : vector<2x32xf32>
    %cst_16 = arith.constant 1.000000e+00 : f32
    %48 = vector.broadcast %cst_16 : f32 to vector<2x32xf32>
    %49 = arith.addf %48, %47 : vector<2x32xf32>
    %50 = arith.divf %48, %49 : vector<2x32xf32>
    %51 = vector.extract_strided_slice %36 {offsets = [0, 64], sizes = [2, 32], strides = [1, 1]} : vector<2x96xf32> to vector<2x32xf32>
    %52 = vector.extract_strided_slice %37 {offsets = [0, 64], sizes = [2, 32], strides = [1, 1]} : vector<2x96xf32> to vector<2x32xf32>
    %53 = vector.broadcast %7 : vector<1x32xf32> to vector<2x32xf32>
    %54 = arith.addf %52, %53 : vector<2x32xf32>
    %55 = arith.mulf %44, %54 : vector<2x32xf32>
    %56 = arith.addf %51, %55 : vector<2x32xf32>
    %57 = math.tanh %56 : vector<2x32xf32>
    %cst_17 = arith.constant 1.000000e+00 : f32
    %58 = vector.broadcast %cst_17 : f32 to vector<2x32xf32>
    %59 = arith.subf %58, %50 : vector<2x32xf32>
    %60 = arith.mulf %59, %57 : vector<2x32xf32>
    %61 = arith.mulf %50, %35 : vector<2x32xf32>
    %62 = arith.addf %60, %61 : vector<2x32xf32>
    %63 = vector.extract_strided_slice %5 {offsets = [4, 0], sizes = [2, 96], strides = [1, 1]} : vector<14x96xf32> to vector<2x96xf32>
    %cst_18 = arith.constant dense<0.000000e+00> : vector<2x96xf32>
    %64 = tpu.matmul %62, %6, %cst_18 {dimension_numbers = #tpu.dot_dimension_numbers<[1], [0], [0], [1], [0, 0, 1, 1], [], []>} : vector<2x32xf32>, vector<32x96xf32>, vector<2x96xf32> -> vector<2x96xf32>
    %65 = arith.addf %63, %64 : vector<2x96xf32>
    %66 = vector.extract_strided_slice %65 {offsets = [0, 0], sizes = [2, 32], strides = [1, 1]} : vector<2x96xf32> to vector<2x32xf32>
    %67 = arith.negf %66 : vector<2x32xf32>
    %68 = math.exp %67 : vector<2x32xf32>
    %cst_19 = arith.constant 1.000000e+00 : f32
    %69 = vector.broadcast %cst_19 : f32 to vector<2x32xf32>
    %70 = arith.addf %69, %68 : vector<2x32xf32>
    %71 = arith.divf %69, %70 : vector<2x32xf32>
    %72 = vector.extract_strided_slice %65 {offsets = [0, 32], sizes = [2, 32], strides = [1, 1]} : vector<2x96xf32> to vector<2x32xf32>
    %73 = arith.negf %72 : vector<2x32xf32>
    %74 = math.exp %73 : vector<2x32xf32>
    %cst_20 = arith.constant 1.000000e+00 : f32
    %75 = vector.broadcast %cst_20 : f32 to vector<2x32xf32>
    %76 = arith.addf %75, %74 : vector<2x32xf32>
    %77 = arith.divf %75, %76 : vector<2x32xf32>
    %78 = vector.extract_strided_slice %63 {offsets = [0, 64], sizes = [2, 32], strides = [1, 1]} : vector<2x96xf32> to vector<2x32xf32>
    %79 = vector.extract_strided_slice %64 {offsets = [0, 64], sizes = [2, 32], strides = [1, 1]} : vector<2x96xf32> to vector<2x32xf32>
    %80 = vector.broadcast %7 : vector<1x32xf32> to vector<2x32xf32>
    %81 = arith.addf %79, %80 : vector<2x32xf32>
    %82 = arith.mulf %71, %81 : vector<2x32xf32>
    %83 = arith.addf %78, %82 : vector<2x32xf32>
    %84 = math.tanh %83 : vector<2x32xf32>
    %cst_21 = arith.constant 1.000000e+00 : f32
    %85 = vector.broadcast %cst_21 : f32 to vector<2x32xf32>
    %86 = arith.subf %85, %77 : vector<2x32xf32>
    %87 = arith.mulf %86, %84 : vector<2x32xf32>
    %88 = arith.mulf %77, %62 : vector<2x32xf32>
    %89 = arith.addf %87, %88 : vector<2x32xf32>
    %90 = vector.extract_strided_slice %5 {offsets = [6, 0], sizes = [2, 96], strides = [1, 1]} : vector<14x96xf32> to vector<2x96xf32>
    %cst_22 = arith.constant dense<0.000000e+00> : vector<2x96xf32>
    %91 = tpu.matmul %89, %6, %cst_22 {dimension_numbers = #tpu.dot_dimension_numbers<[1], [0], [0], [1], [0, 0, 1, 1], [], []>} : vector<2x32xf32>, vector<32x96xf32>, vector<2x96xf32> -> vector<2x96xf32>
    %92 = arith.addf %90, %91 : vector<2x96xf32>
    %93 = vector.extract_strided_slice %92 {offsets = [0, 0], sizes = [2, 32], strides = [1, 1]} : vector<2x96xf32> to vector<2x32xf32>
    %94 = arith.negf %93 : vector<2x32xf32>
    %95 = math.exp %94 : vector<2x32xf32>
    %cst_23 = arith.constant 1.000000e+00 : f32
    %96 = vector.broadcast %cst_23 : f32 to vector<2x32xf32>
    %97 = arith.addf %96, %95 : vector<2x32xf32>
    %98 = arith.divf %96, %97 : vector<2x32xf32>
    %99 = vector.extract_strided_slice %92 {offsets = [0, 32], sizes = [2, 32], strides = [1, 1]} : vector<2x96xf32> to vector<2x32xf32>
    %100 = arith.negf %99 : vector<2x32xf32>
    %101 = math.exp %100 : vector<2x32xf32>
    %cst_24 = arith.constant 1.000000e+00 : f32
    %102 = vector.broadcast %cst_24 : f32 to vector<2x32xf32>
    %103 = arith.addf %102, %101 : vector<2x32xf32>
    %104 = arith.divf %102, %103 : vector<2x32xf32>
    %105 = vector.extract_strided_slice %90 {offsets = [0, 64], sizes = [2, 32], strides = [1, 1]} : vector<2x96xf32> to vector<2x32xf32>
    %106 = vector.extract_strided_slice %91 {offsets = [0, 64], sizes = [2, 32], strides = [1, 1]} : vector<2x96xf32> to vector<2x32xf32>
    %107 = vector.broadcast %7 : vector<1x32xf32> to vector<2x32xf32>
    %108 = arith.addf %106, %107 : vector<2x32xf32>
    %109 = arith.mulf %98, %108 : vector<2x32xf32>
    %110 = arith.addf %105, %109 : vector<2x32xf32>
    %111 = math.tanh %110 : vector<2x32xf32>
    %cst_25 = arith.constant 1.000000e+00 : f32
    %112 = vector.broadcast %cst_25 : f32 to vector<2x32xf32>
    %113 = arith.subf %112, %104 : vector<2x32xf32>
    %114 = arith.mulf %113, %111 : vector<2x32xf32>
    %115 = arith.mulf %104, %89 : vector<2x32xf32>
    %116 = arith.addf %114, %115 : vector<2x32xf32>
    %117 = vector.extract_strided_slice %5 {offsets = [8, 0], sizes = [2, 96], strides = [1, 1]} : vector<14x96xf32> to vector<2x96xf32>
    %cst_26 = arith.constant dense<0.000000e+00> : vector<2x96xf32>
    %118 = tpu.matmul %116, %6, %cst_26 {dimension_numbers = #tpu.dot_dimension_numbers<[1], [0], [0], [1], [0, 0, 1, 1], [], []>} : vector<2x32xf32>, vector<32x96xf32>, vector<2x96xf32> -> vector<2x96xf32>
    %119 = arith.addf %117, %118 : vector<2x96xf32>
    %120 = vector.extract_strided_slice %119 {offsets = [0, 0], sizes = [2, 32], strides = [1, 1]} : vector<2x96xf32> to vector<2x32xf32>
    %121 = arith.negf %120 : vector<2x32xf32>
    %122 = math.exp %121 : vector<2x32xf32>
    %cst_27 = arith.constant 1.000000e+00 : f32
    %123 = vector.broadcast %cst_27 : f32 to vector<2x32xf32>
    %124 = arith.addf %123, %122 : vector<2x32xf32>
    %125 = arith.divf %123, %124 : vector<2x32xf32>
    %126 = vector.extract_strided_slice %119 {offsets = [0, 32], sizes = [2, 32], strides = [1, 1]} : vector<2x96xf32> to vector<2x32xf32>
    %127 = arith.negf %126 : vector<2x32xf32>
    %128 = math.exp %127 : vector<2x32xf32>
    %cst_28 = arith.constant 1.000000e+00 : f32
    %129 = vector.broadcast %cst_28 : f32 to vector<2x32xf32>
    %130 = arith.addf %129, %128 : vector<2x32xf32>
    %131 = arith.divf %129, %130 : vector<2x32xf32>
    %132 = vector.extract_strided_slice %117 {offsets = [0, 64], sizes = [2, 32], strides = [1, 1]} : vector<2x96xf32> to vector<2x32xf32>
    %133 = vector.extract_strided_slice %118 {offsets = [0, 64], sizes = [2, 32], strides = [1, 1]} : vector<2x96xf32> to vector<2x32xf32>
    %134 = vector.broadcast %7 : vector<1x32xf32> to vector<2x32xf32>
    %135 = arith.addf %133, %134 : vector<2x32xf32>
    %136 = arith.mulf %125, %135 : vector<2x32xf32>
    %137 = arith.addf %132, %136 : vector<2x32xf32>
    %138 = math.tanh %137 : vector<2x32xf32>
    %cst_29 = arith.constant 1.000000e+00 : f32
    %139 = vector.broadcast %cst_29 : f32 to vector<2x32xf32>
    %140 = arith.subf %139, %131 : vector<2x32xf32>
    %141 = arith.mulf %140, %138 : vector<2x32xf32>
    %142 = arith.mulf %131, %116 : vector<2x32xf32>
    %143 = arith.addf %141, %142 : vector<2x32xf32>
    %144 = vector.extract_strided_slice %5 {offsets = [10, 0], sizes = [2, 96], strides = [1, 1]} : vector<14x96xf32> to vector<2x96xf32>
    %cst_30 = arith.constant dense<0.000000e+00> : vector<2x96xf32>
    %145 = tpu.matmul %143, %6, %cst_30 {dimension_numbers = #tpu.dot_dimension_numbers<[1], [0], [0], [1], [0, 0, 1, 1], [], []>} : vector<2x32xf32>, vector<32x96xf32>, vector<2x96xf32> -> vector<2x96xf32>
    %146 = arith.addf %144, %145 : vector<2x96xf32>
    %147 = vector.extract_strided_slice %146 {offsets = [0, 0], sizes = [2, 32], strides = [1, 1]} : vector<2x96xf32> to vector<2x32xf32>
    %148 = arith.negf %147 : vector<2x32xf32>
    %149 = math.exp %148 : vector<2x32xf32>
    %cst_31 = arith.constant 1.000000e+00 : f32
    %150 = vector.broadcast %cst_31 : f32 to vector<2x32xf32>
    %151 = arith.addf %150, %149 : vector<2x32xf32>
    %152 = arith.divf %150, %151 : vector<2x32xf32>
    %153 = vector.extract_strided_slice %146 {offsets = [0, 32], sizes = [2, 32], strides = [1, 1]} : vector<2x96xf32> to vector<2x32xf32>
    %154 = arith.negf %153 : vector<2x32xf32>
    %155 = math.exp %154 : vector<2x32xf32>
    %cst_32 = arith.constant 1.000000e+00 : f32
    %156 = vector.broadcast %cst_32 : f32 to vector<2x32xf32>
    %157 = arith.addf %156, %155 : vector<2x32xf32>
    %158 = arith.divf %156, %157 : vector<2x32xf32>
    %159 = vector.extract_strided_slice %144 {offsets = [0, 64], sizes = [2, 32], strides = [1, 1]} : vector<2x96xf32> to vector<2x32xf32>
    %160 = vector.extract_strided_slice %145 {offsets = [0, 64], sizes = [2, 32], strides = [1, 1]} : vector<2x96xf32> to vector<2x32xf32>
    %161 = vector.broadcast %7 : vector<1x32xf32> to vector<2x32xf32>
    %162 = arith.addf %160, %161 : vector<2x32xf32>
    %163 = arith.mulf %152, %162 : vector<2x32xf32>
    %164 = arith.addf %159, %163 : vector<2x32xf32>
    %165 = math.tanh %164 : vector<2x32xf32>
    %cst_33 = arith.constant 1.000000e+00 : f32
    %166 = vector.broadcast %cst_33 : f32 to vector<2x32xf32>
    %167 = arith.subf %166, %158 : vector<2x32xf32>
    %168 = arith.mulf %167, %165 : vector<2x32xf32>
    %169 = arith.mulf %158, %143 : vector<2x32xf32>
    %170 = arith.addf %168, %169 : vector<2x32xf32>
    %171 = vector.extract_strided_slice %5 {offsets = [12, 0], sizes = [2, 96], strides = [1, 1]} : vector<14x96xf32> to vector<2x96xf32>
    %cst_34 = arith.constant dense<0.000000e+00> : vector<2x96xf32>
    %172 = tpu.matmul %170, %6, %cst_34 {dimension_numbers = #tpu.dot_dimension_numbers<[1], [0], [0], [1], [0, 0, 1, 1], [], []>} : vector<2x32xf32>, vector<32x96xf32>, vector<2x96xf32> -> vector<2x96xf32>
    %173 = arith.addf %171, %172 : vector<2x96xf32>
    %174 = vector.extract_strided_slice %173 {offsets = [0, 0], sizes = [2, 32], strides = [1, 1]} : vector<2x96xf32> to vector<2x32xf32>
    %175 = arith.negf %174 : vector<2x32xf32>
    %176 = math.exp %175 : vector<2x32xf32>
    %cst_35 = arith.constant 1.000000e+00 : f32
    %177 = vector.broadcast %cst_35 : f32 to vector<2x32xf32>
    %178 = arith.addf %177, %176 : vector<2x32xf32>
    %179 = arith.divf %177, %178 : vector<2x32xf32>
    %180 = vector.extract_strided_slice %173 {offsets = [0, 32], sizes = [2, 32], strides = [1, 1]} : vector<2x96xf32> to vector<2x32xf32>
    %181 = arith.negf %180 : vector<2x32xf32>
    %182 = math.exp %181 : vector<2x32xf32>
    %cst_36 = arith.constant 1.000000e+00 : f32
    %183 = vector.broadcast %cst_36 : f32 to vector<2x32xf32>
    %184 = arith.addf %183, %182 : vector<2x32xf32>
    %185 = arith.divf %183, %184 : vector<2x32xf32>
    %186 = vector.extract_strided_slice %171 {offsets = [0, 64], sizes = [2, 32], strides = [1, 1]} : vector<2x96xf32> to vector<2x32xf32>
    %187 = vector.extract_strided_slice %172 {offsets = [0, 64], sizes = [2, 32], strides = [1, 1]} : vector<2x96xf32> to vector<2x32xf32>
    %188 = vector.broadcast %7 : vector<1x32xf32> to vector<2x32xf32>
    %189 = arith.addf %187, %188 : vector<2x32xf32>
    %190 = arith.mulf %179, %189 : vector<2x32xf32>
    %191 = arith.addf %186, %190 : vector<2x32xf32>
    %192 = math.tanh %191 : vector<2x32xf32>
    %cst_37 = arith.constant 1.000000e+00 : f32
    %193 = vector.broadcast %cst_37 : f32 to vector<2x32xf32>
    %194 = arith.subf %193, %185 : vector<2x32xf32>
    %195 = arith.mulf %194, %192 : vector<2x32xf32>
    %196 = arith.mulf %185, %170 : vector<2x32xf32>
    %197 = arith.addf %195, %196 : vector<2x32xf32>
    %c0_38 = arith.constant 0 : index
    %c0_39 = arith.constant 0 : index
    %198 = vector.load %arg7[%c0_38, %c0_39] : memref<32x96xf32, #tpu.memory_space<vmem>>, vector<32x96xf32>
    %c0_40 = arith.constant 0 : index
    %c0_41 = arith.constant 0 : index
    %199 = vector.load %arg8[%c0_40, %c0_41] : memref<1x32xf32, #tpu.memory_space<vmem>>, vector<1x32xf32>
    %c0_42 = arith.constant 0 : index
    %c0_43 = arith.constant 0 : index
    %200 = vector.load %arg5[%c0_42, %c0_43] : memref<32x96xf32, #tpu.memory_space<vmem>>, vector<32x96xf32>
    %c0_44 = arith.constant 0 : index
    %c0_45 = arith.constant 0 : index
    %201 = vector.load %arg6[%c0_44, %c0_45] : memref<1x96xf32, #tpu.memory_space<vmem>>, vector<1x96xf32>
    %cst_46 = arith.constant 0.000000e+00 : f32
    %202 = vector.broadcast %cst_46 : f32 to vector<2x32xf32>
    %cst_47 = arith.constant dense<0.000000e+00> : vector<2x96xf32>
    %203 = tpu.matmul %35, %200, %cst_47 {dimension_numbers = #tpu.dot_dimension_numbers<[1], [0], [0], [1], [0, 0, 1, 1], [], []>} : vector<2x32xf32>, vector<32x96xf32>, vector<2x96xf32> -> vector<2x96xf32>
    %204 = vector.broadcast %201 : vector<1x96xf32> to vector<2x96xf32>
    %205 = arith.addf %203, %204 : vector<2x96xf32>
    %cst_48 = arith.constant dense<0.000000e+00> : vector<2x96xf32>
    %206 = tpu.matmul %202, %198, %cst_48 {dimension_numbers = #tpu.dot_dimension_numbers<[1], [0], [0], [1], [0, 0, 1, 1], [], []>} : vector<2x32xf32>, vector<32x96xf32>, vector<2x96xf32> -> vector<2x96xf32>
    %207 = arith.addf %205, %206 : vector<2x96xf32>
    %208 = vector.extract_strided_slice %207 {offsets = [0, 0], sizes = [2, 32], strides = [1, 1]} : vector<2x96xf32> to vector<2x32xf32>
    %209 = arith.negf %208 : vector<2x32xf32>
    %210 = math.exp %209 : vector<2x32xf32>
    %cst_49 = arith.constant 1.000000e+00 : f32
    %211 = vector.broadcast %cst_49 : f32 to vector<2x32xf32>
    %212 = arith.addf %211, %210 : vector<2x32xf32>
    %213 = arith.divf %211, %212 : vector<2x32xf32>
    %214 = vector.extract_strided_slice %207 {offsets = [0, 32], sizes = [2, 32], strides = [1, 1]} : vector<2x96xf32> to vector<2x32xf32>
    %215 = arith.negf %214 : vector<2x32xf32>
    %216 = math.exp %215 : vector<2x32xf32>
    %cst_50 = arith.constant 1.000000e+00 : f32
    %217 = vector.broadcast %cst_50 : f32 to vector<2x32xf32>
    %218 = arith.addf %217, %216 : vector<2x32xf32>
    %219 = arith.divf %217, %218 : vector<2x32xf32>
    %220 = vector.extract_strided_slice %205 {offsets = [0, 64], sizes = [2, 32], strides = [1, 1]} : vector<2x96xf32> to vector<2x32xf32>
    %221 = vector.extract_strided_slice %206 {offsets = [0, 64], sizes = [2, 32], strides = [1, 1]} : vector<2x96xf32> to vector<2x32xf32>
    %222 = vector.broadcast %199 : vector<1x32xf32> to vector<2x32xf32>
    %223 = arith.addf %221, %222 : vector<2x32xf32>
    %224 = arith.mulf %213, %223 : vector<2x32xf32>
    %225 = arith.addf %220, %224 : vector<2x32xf32>
    %226 = math.tanh %225 : vector<2x32xf32>
    %cst_51 = arith.constant 1.000000e+00 : f32
    %227 = vector.broadcast %cst_51 : f32 to vector<2x32xf32>
    %228 = arith.subf %227, %219 : vector<2x32xf32>
    %229 = arith.mulf %228, %226 : vector<2x32xf32>
    %230 = arith.mulf %219, %202 : vector<2x32xf32>
    %231 = arith.addf %229, %230 : vector<2x32xf32>
    %cst_52 = arith.constant dense<0.000000e+00> : vector<2x96xf32>
    %232 = tpu.matmul %62, %200, %cst_52 {dimension_numbers = #tpu.dot_dimension_numbers<[1], [0], [0], [1], [0, 0, 1, 1], [], []>} : vector<2x32xf32>, vector<32x96xf32>, vector<2x96xf32> -> vector<2x96xf32>
    %233 = vector.broadcast %201 : vector<1x96xf32> to vector<2x96xf32>
    %234 = arith.addf %232, %233 : vector<2x96xf32>
    %cst_53 = arith.constant dense<0.000000e+00> : vector<2x96xf32>
    %235 = tpu.matmul %231, %198, %cst_53 {dimension_numbers = #tpu.dot_dimension_numbers<[1], [0], [0], [1], [0, 0, 1, 1], [], []>} : vector<2x32xf32>, vector<32x96xf32>, vector<2x96xf32> -> vector<2x96xf32>
    %236 = arith.addf %234, %235 : vector<2x96xf32>
    %237 = vector.extract_strided_slice %236 {offsets = [0, 0], sizes = [2, 32], strides = [1, 1]} : vector<2x96xf32> to vector<2x32xf32>
    %238 = arith.negf %237 : vector<2x32xf32>
    %239 = math.exp %238 : vector<2x32xf32>
    %cst_54 = arith.constant 1.000000e+00 : f32
    %240 = vector.broadcast %cst_54 : f32 to vector<2x32xf32>
    %241 = arith.addf %240, %239 : vector<2x32xf32>
    %242 = arith.divf %240, %241 : vector<2x32xf32>
    %243 = vector.extract_strided_slice %236 {offsets = [0, 32], sizes = [2, 32], strides = [1, 1]} : vector<2x96xf32> to vector<2x32xf32>
    %244 = arith.negf %243 : vector<2x32xf32>
    %245 = math.exp %244 : vector<2x32xf32>
    %cst_55 = arith.constant 1.000000e+00 : f32
    %246 = vector.broadcast %cst_55 : f32 to vector<2x32xf32>
    %247 = arith.addf %246, %245 : vector<2x32xf32>
    %248 = arith.divf %246, %247 : vector<2x32xf32>
    %249 = vector.extract_strided_slice %234 {offsets = [0, 64], sizes = [2, 32], strides = [1, 1]} : vector<2x96xf32> to vector<2x32xf32>
    %250 = vector.extract_strided_slice %235 {offsets = [0, 64], sizes = [2, 32], strides = [1, 1]} : vector<2x96xf32> to vector<2x32xf32>
    %251 = vector.broadcast %199 : vector<1x32xf32> to vector<2x32xf32>
    %252 = arith.addf %250, %251 : vector<2x32xf32>
    %253 = arith.mulf %242, %252 : vector<2x32xf32>
    %254 = arith.addf %249, %253 : vector<2x32xf32>
    %255 = math.tanh %254 : vector<2x32xf32>
    %cst_56 = arith.constant 1.000000e+00 : f32
    %256 = vector.broadcast %cst_56 : f32 to vector<2x32xf32>
    %257 = arith.subf %256, %248 : vector<2x32xf32>
    %258 = arith.mulf %257, %255 : vector<2x32xf32>
    %259 = arith.mulf %248, %231 : vector<2x32xf32>
    %260 = arith.addf %258, %259 : vector<2x32xf32>
    %cst_57 = arith.constant dense<0.000000e+00> : vector<2x96xf32>
    %261 = tpu.matmul %89, %200, %cst_57 {dimension_numbers = #tpu.dot_dimension_numbers<[1], [0], [0], [1], [0, 0, 1, 1], [], []>} : vector<2x32xf32>, vector<32x96xf32>, vector<2x96xf32> -> vector<2x96xf32>
    %262 = vector.broadcast %201 : vector<1x96xf32> to vector<2x96xf32>
    %263 = arith.addf %261, %262 : vector<2x96xf32>
    %cst_58 = arith.constant dense<0.000000e+00> : vector<2x96xf32>
    %264 = tpu.matmul %260, %198, %cst_58 {dimension_numbers = #tpu.dot_dimension_numbers<[1], [0], [0], [1], [0, 0, 1, 1], [], []>} : vector<2x32xf32>, vector<32x96xf32>, vector<2x96xf32> -> vector<2x96xf32>
    %265 = arith.addf %263, %264 : vector<2x96xf32>
    %266 = vector.extract_strided_slice %265 {offsets = [0, 0], sizes = [2, 32], strides = [1, 1]} : vector<2x96xf32> to vector<2x32xf32>
    %267 = arith.negf %266 : vector<2x32xf32>
    %268 = math.exp %267 : vector<2x32xf32>
    %cst_59 = arith.constant 1.000000e+00 : f32
    %269 = vector.broadcast %cst_59 : f32 to vector<2x32xf32>
    %270 = arith.addf %269, %268 : vector<2x32xf32>
    %271 = arith.divf %269, %270 : vector<2x32xf32>
    %272 = vector.extract_strided_slice %265 {offsets = [0, 32], sizes = [2, 32], strides = [1, 1]} : vector<2x96xf32> to vector<2x32xf32>
    %273 = arith.negf %272 : vector<2x32xf32>
    %274 = math.exp %273 : vector<2x32xf32>
    %cst_60 = arith.constant 1.000000e+00 : f32
    %275 = vector.broadcast %cst_60 : f32 to vector<2x32xf32>
    %276 = arith.addf %275, %274 : vector<2x32xf32>
    %277 = arith.divf %275, %276 : vector<2x32xf32>
    %278 = vector.extract_strided_slice %263 {offsets = [0, 64], sizes = [2, 32], strides = [1, 1]} : vector<2x96xf32> to vector<2x32xf32>
    %279 = vector.extract_strided_slice %264 {offsets = [0, 64], sizes = [2, 32], strides = [1, 1]} : vector<2x96xf32> to vector<2x32xf32>
    %280 = vector.broadcast %199 : vector<1x32xf32> to vector<2x32xf32>
    %281 = arith.addf %279, %280 : vector<2x32xf32>
    %282 = arith.mulf %271, %281 : vector<2x32xf32>
    %283 = arith.addf %278, %282 : vector<2x32xf32>
    %284 = math.tanh %283 : vector<2x32xf32>
    %cst_61 = arith.constant 1.000000e+00 : f32
    %285 = vector.broadcast %cst_61 : f32 to vector<2x32xf32>
    %286 = arith.subf %285, %277 : vector<2x32xf32>
    %287 = arith.mulf %286, %284 : vector<2x32xf32>
    %288 = arith.mulf %277, %260 : vector<2x32xf32>
    %289 = arith.addf %287, %288 : vector<2x32xf32>
    %cst_62 = arith.constant dense<0.000000e+00> : vector<2x96xf32>
    %290 = tpu.matmul %116, %200, %cst_62 {dimension_numbers = #tpu.dot_dimension_numbers<[1], [0], [0], [1], [0, 0, 1, 1], [], []>} : vector<2x32xf32>, vector<32x96xf32>, vector<2x96xf32> -> vector<2x96xf32>
    %291 = vector.broadcast %201 : vector<1x96xf32> to vector<2x96xf32>
    %292 = arith.addf %290, %291 : vector<2x96xf32>
    %cst_63 = arith.constant dense<0.000000e+00> : vector<2x96xf32>
    %293 = tpu.matmul %289, %198, %cst_63 {dimension_numbers = #tpu.dot_dimension_numbers<[1], [0], [0], [1], [0, 0, 1, 1], [], []>} : vector<2x32xf32>, vector<32x96xf32>, vector<2x96xf32> -> vector<2x96xf32>
    %294 = arith.addf %292, %293 : vector<2x96xf32>
    %295 = vector.extract_strided_slice %294 {offsets = [0, 0], sizes = [2, 32], strides = [1, 1]} : vector<2x96xf32> to vector<2x32xf32>
    %296 = arith.negf %295 : vector<2x32xf32>
    %297 = math.exp %296 : vector<2x32xf32>
    %cst_64 = arith.constant 1.000000e+00 : f32
    %298 = vector.broadcast %cst_64 : f32 to vector<2x32xf32>
    %299 = arith.addf %298, %297 : vector<2x32xf32>
    %300 = arith.divf %298, %299 : vector<2x32xf32>
    %301 = vector.extract_strided_slice %294 {offsets = [0, 32], sizes = [2, 32], strides = [1, 1]} : vector<2x96xf32> to vector<2x32xf32>
    %302 = arith.negf %301 : vector<2x32xf32>
    %303 = math.exp %302 : vector<2x32xf32>
    %cst_65 = arith.constant 1.000000e+00 : f32
    %304 = vector.broadcast %cst_65 : f32 to vector<2x32xf32>
    %305 = arith.addf %304, %303 : vector<2x32xf32>
    %306 = arith.divf %304, %305 : vector<2x32xf32>
    %307 = vector.extract_strided_slice %292 {offsets = [0, 64], sizes = [2, 32], strides = [1, 1]} : vector<2x96xf32> to vector<2x32xf32>
    %308 = vector.extract_strided_slice %293 {offsets = [0, 64], sizes = [2, 32], strides = [1, 1]} : vector<2x96xf32> to vector<2x32xf32>
    %309 = vector.broadcast %199 : vector<1x32xf32> to vector<2x32xf32>
    %310 = arith.addf %308, %309 : vector<2x32xf32>
    %311 = arith.mulf %300, %310 : vector<2x32xf32>
    %312 = arith.addf %307, %311 : vector<2x32xf32>
    %313 = math.tanh %312 : vector<2x32xf32>
    %cst_66 = arith.constant 1.000000e+00 : f32
    %314 = vector.broadcast %cst_66 : f32 to vector<2x32xf32>
    %315 = arith.subf %314, %306 : vector<2x32xf32>
    %316 = arith.mulf %315, %313 : vector<2x32xf32>
    %317 = arith.mulf %306, %289 : vector<2x32xf32>
    %318 = arith.addf %316, %317 : vector<2x32xf32>
    %cst_67 = arith.constant dense<0.000000e+00> : vector<2x96xf32>
    %319 = tpu.matmul %143, %200, %cst_67 {dimension_numbers = #tpu.dot_dimension_numbers<[1], [0], [0], [1], [0, 0, 1, 1], [], []>} : vector<2x32xf32>, vector<32x96xf32>, vector<2x96xf32> -> vector<2x96xf32>
    %320 = vector.broadcast %201 : vector<1x96xf32> to vector<2x96xf32>
    %321 = arith.addf %319, %320 : vector<2x96xf32>
    %cst_68 = arith.constant dense<0.000000e+00> : vector<2x96xf32>
    %322 = tpu.matmul %318, %198, %cst_68 {dimension_numbers = #tpu.dot_dimension_numbers<[1], [0], [0], [1], [0, 0, 1, 1], [], []>} : vector<2x32xf32>, vector<32x96xf32>, vector<2x96xf32> -> vector<2x96xf32>
    %323 = arith.addf %321, %322 : vector<2x96xf32>
    %324 = vector.extract_strided_slice %323 {offsets = [0, 0], sizes = [2, 32], strides = [1, 1]} : vector<2x96xf32> to vector<2x32xf32>
    %325 = arith.negf %324 : vector<2x32xf32>
    %326 = math.exp %325 : vector<2x32xf32>
    %cst_69 = arith.constant 1.000000e+00 : f32
    %327 = vector.broadcast %cst_69 : f32 to vector<2x32xf32>
    %328 = arith.addf %327, %326 : vector<2x32xf32>
    %329 = arith.divf %327, %328 : vector<2x32xf32>
    %330 = vector.extract_strided_slice %323 {offsets = [0, 32], sizes = [2, 32], strides = [1, 1]} : vector<2x96xf32> to vector<2x32xf32>
    %331 = arith.negf %330 : vector<2x32xf32>
    %332 = math.exp %331 : vector<2x32xf32>
    %cst_70 = arith.constant 1.000000e+00 : f32
    %333 = vector.broadcast %cst_70 : f32 to vector<2x32xf32>
    %334 = arith.addf %333, %332 : vector<2x32xf32>
    %335 = arith.divf %333, %334 : vector<2x32xf32>
    %336 = vector.extract_strided_slice %321 {offsets = [0, 64], sizes = [2, 32], strides = [1, 1]} : vector<2x96xf32> to vector<2x32xf32>
    %337 = vector.extract_strided_slice %322 {offsets = [0, 64], sizes = [2, 32], strides = [1, 1]} : vector<2x96xf32> to vector<2x32xf32>
    %338 = vector.broadcast %199 : vector<1x32xf32> to vector<2x32xf32>
    %339 = arith.addf %337, %338 : vector<2x32xf32>
    %340 = arith.mulf %329, %339 : vector<2x32xf32>
    %341 = arith.addf %336, %340 : vector<2x32xf32>
    %342 = math.tanh %341 : vector<2x32xf32>
    %cst_71 = arith.constant 1.000000e+00 : f32
    %343 = vector.broadcast %cst_71 : f32 to vector<2x32xf32>
    %344 = arith.subf %343, %335 : vector<2x32xf32>
    %345 = arith.mulf %344, %342 : vector<2x32xf32>
    %346 = arith.mulf %335, %318 : vector<2x32xf32>
    %347 = arith.addf %345, %346 : vector<2x32xf32>
    %cst_72 = arith.constant dense<0.000000e+00> : vector<2x96xf32>
    %348 = tpu.matmul %170, %200, %cst_72 {dimension_numbers = #tpu.dot_dimension_numbers<[1], [0], [0], [1], [0, 0, 1, 1], [], []>} : vector<2x32xf32>, vector<32x96xf32>, vector<2x96xf32> -> vector<2x96xf32>
    %349 = vector.broadcast %201 : vector<1x96xf32> to vector<2x96xf32>
    %350 = arith.addf %348, %349 : vector<2x96xf32>
    %cst_73 = arith.constant dense<0.000000e+00> : vector<2x96xf32>
    %351 = tpu.matmul %347, %198, %cst_73 {dimension_numbers = #tpu.dot_dimension_numbers<[1], [0], [0], [1], [0, 0, 1, 1], [], []>} : vector<2x32xf32>, vector<32x96xf32>, vector<2x96xf32> -> vector<2x96xf32>
    %352 = arith.addf %350, %351 : vector<2x96xf32>
    %353 = vector.extract_strided_slice %352 {offsets = [0, 0], sizes = [2, 32], strides = [1, 1]} : vector<2x96xf32> to vector<2x32xf32>
    %354 = arith.negf %353 : vector<2x32xf32>
    %355 = math.exp %354 : vector<2x32xf32>
    %cst_74 = arith.constant 1.000000e+00 : f32
    %356 = vector.broadcast %cst_74 : f32 to vector<2x32xf32>
    %357 = arith.addf %356, %355 : vector<2x32xf32>
    %358 = arith.divf %356, %357 : vector<2x32xf32>
    %359 = vector.extract_strided_slice %352 {offsets = [0, 32], sizes = [2, 32], strides = [1, 1]} : vector<2x96xf32> to vector<2x32xf32>
    %360 = arith.negf %359 : vector<2x32xf32>
    %361 = math.exp %360 : vector<2x32xf32>
    %cst_75 = arith.constant 1.000000e+00 : f32
    %362 = vector.broadcast %cst_75 : f32 to vector<2x32xf32>
    %363 = arith.addf %362, %361 : vector<2x32xf32>
    %364 = arith.divf %362, %363 : vector<2x32xf32>
    %365 = vector.extract_strided_slice %350 {offsets = [0, 64], sizes = [2, 32], strides = [1, 1]} : vector<2x96xf32> to vector<2x32xf32>
    %366 = vector.extract_strided_slice %351 {offsets = [0, 64], sizes = [2, 32], strides = [1, 1]} : vector<2x96xf32> to vector<2x32xf32>
    %367 = vector.broadcast %199 : vector<1x32xf32> to vector<2x32xf32>
    %368 = arith.addf %366, %367 : vector<2x32xf32>
    %369 = arith.mulf %358, %368 : vector<2x32xf32>
    %370 = arith.addf %365, %369 : vector<2x32xf32>
    %371 = math.tanh %370 : vector<2x32xf32>
    %cst_76 = arith.constant 1.000000e+00 : f32
    %372 = vector.broadcast %cst_76 : f32 to vector<2x32xf32>
    %373 = arith.subf %372, %364 : vector<2x32xf32>
    %374 = arith.mulf %373, %371 : vector<2x32xf32>
    %375 = arith.mulf %364, %347 : vector<2x32xf32>
    %376 = arith.addf %374, %375 : vector<2x32xf32>
    %cst_77 = arith.constant dense<0.000000e+00> : vector<2x96xf32>
    %377 = tpu.matmul %197, %200, %cst_77 {dimension_numbers = #tpu.dot_dimension_numbers<[1], [0], [0], [1], [0, 0, 1, 1], [], []>} : vector<2x32xf32>, vector<32x96xf32>, vector<2x96xf32> -> vector<2x96xf32>
    %378 = vector.broadcast %201 : vector<1x96xf32> to vector<2x96xf32>
    %379 = arith.addf %377, %378 : vector<2x96xf32>
    %cst_78 = arith.constant dense<0.000000e+00> : vector<2x96xf32>
    %380 = tpu.matmul %376, %198, %cst_78 {dimension_numbers = #tpu.dot_dimension_numbers<[1], [0], [0], [1], [0, 0, 1, 1], [], []>} : vector<2x32xf32>, vector<32x96xf32>, vector<2x96xf32> -> vector<2x96xf32>
    %381 = arith.addf %379, %380 : vector<2x96xf32>
    %382 = vector.extract_strided_slice %381 {offsets = [0, 0], sizes = [2, 32], strides = [1, 1]} : vector<2x96xf32> to vector<2x32xf32>
    %383 = arith.negf %382 : vector<2x32xf32>
    %384 = math.exp %383 : vector<2x32xf32>
    %cst_79 = arith.constant 1.000000e+00 : f32
    %385 = vector.broadcast %cst_79 : f32 to vector<2x32xf32>
    %386 = arith.addf %385, %384 : vector<2x32xf32>
    %387 = arith.divf %385, %386 : vector<2x32xf32>
    %388 = vector.extract_strided_slice %381 {offsets = [0, 32], sizes = [2, 32], strides = [1, 1]} : vector<2x96xf32> to vector<2x32xf32>
    %389 = arith.negf %388 : vector<2x32xf32>
    %390 = math.exp %389 : vector<2x32xf32>
    %cst_80 = arith.constant 1.000000e+00 : f32
    %391 = vector.broadcast %cst_80 : f32 to vector<2x32xf32>
    %392 = arith.addf %391, %390 : vector<2x32xf32>
    %393 = arith.divf %391, %392 : vector<2x32xf32>
    %394 = vector.extract_strided_slice %379 {offsets = [0, 64], sizes = [2, 32], strides = [1, 1]} : vector<2x96xf32> to vector<2x32xf32>
    %395 = vector.extract_strided_slice %380 {offsets = [0, 64], sizes = [2, 32], strides = [1, 1]} : vector<2x96xf32> to vector<2x32xf32>
    %396 = vector.broadcast %199 : vector<1x32xf32> to vector<2x32xf32>
    %397 = arith.addf %395, %396 : vector<2x32xf32>
    %398 = arith.mulf %387, %397 : vector<2x32xf32>
    %399 = arith.addf %394, %398 : vector<2x32xf32>
    %400 = math.tanh %399 : vector<2x32xf32>
    %cst_81 = arith.constant 1.000000e+00 : f32
    %401 = vector.broadcast %cst_81 : f32 to vector<2x32xf32>
    %402 = arith.subf %401, %393 : vector<2x32xf32>
    %403 = arith.mulf %402, %400 : vector<2x32xf32>
    %404 = arith.mulf %393, %376 : vector<2x32xf32>
    %405 = arith.addf %403, %404 : vector<2x32xf32>
    %c0_82 = arith.constant 0 : index
    %c0_83 = arith.constant 0 : index
    %406 = vector.load %arg9[%c0_82, %c0_83] : memref<32x32xf32, #tpu.memory_space<vmem>>, vector<32x32xf32>
    %c0_84 = arith.constant 0 : index
    %c0_85 = arith.constant 0 : index
    %407 = vector.load %arg10[%c0_84, %c0_85] : memref<1x32xf32, #tpu.memory_space<vmem>>, vector<1x32xf32>
    %c0_86 = arith.constant 0 : index
    %c0_87 = arith.constant 0 : index
    %408 = vector.load %arg11[%c0_86, %c0_87] : memref<1x32xf32, #tpu.memory_space<vmem>>, vector<1x32xf32>
    %c0_88 = arith.constant 0 : index
    %c0_89 = arith.constant 0 : index
    %409 = vector.load %arg12[%c0_88, %c0_89] : memref<1x1xf32, #tpu.memory_space<vmem>>, vector<1x1xf32>
    %cst_90 = arith.constant dense<0.000000e+00> : vector<2x32xf32>
    %410 = tpu.matmul %231, %406, %cst_90 {dimension_numbers = #tpu.dot_dimension_numbers<[1], [0], [0], [1], [0, 0, 1, 1], [], []>} : vector<2x32xf32>, vector<32x32xf32>, vector<2x32xf32> -> vector<2x32xf32>
    %411 = vector.broadcast %407 : vector<1x32xf32> to vector<2x32xf32>
    %412 = arith.addf %410, %411 : vector<2x32xf32>
    %413 = math.tanh %412 : vector<2x32xf32>
    %414 = vector.broadcast %408 : vector<1x32xf32> to vector<2x32xf32>
    %415 = arith.mulf %413, %414 : vector<2x32xf32>
    %cst_91 = arith.constant dense<0.000000e+00> : vector<2xf32>
    %416 = vector.multi_reduction <add>, %415, %cst_91 [1] : vector<2x32xf32> to vector<2xf32>
    %417 = vector.shape_cast %416 : vector<2xf32> to vector<2x1xf32>
    %418 = vector.broadcast %409 : vector<1x1xf32> to vector<2x1xf32>
    %419 = arith.addf %417, %418 : vector<2x1xf32>
    %cst_92 = arith.constant dense<0.000000e+00> : vector<2x32xf32>
    %420 = tpu.matmul %260, %406, %cst_92 {dimension_numbers = #tpu.dot_dimension_numbers<[1], [0], [0], [1], [0, 0, 1, 1], [], []>} : vector<2x32xf32>, vector<32x32xf32>, vector<2x32xf32> -> vector<2x32xf32>
    %421 = vector.broadcast %407 : vector<1x32xf32> to vector<2x32xf32>
    %422 = arith.addf %420, %421 : vector<2x32xf32>
    %423 = math.tanh %422 : vector<2x32xf32>
    %424 = vector.broadcast %408 : vector<1x32xf32> to vector<2x32xf32>
    %425 = arith.mulf %423, %424 : vector<2x32xf32>
    %cst_93 = arith.constant dense<0.000000e+00> : vector<2xf32>
    %426 = vector.multi_reduction <add>, %425, %cst_93 [1] : vector<2x32xf32> to vector<2xf32>
    %427 = vector.shape_cast %426 : vector<2xf32> to vector<2x1xf32>
    %428 = vector.broadcast %409 : vector<1x1xf32> to vector<2x1xf32>
    %429 = arith.addf %427, %428 : vector<2x1xf32>
    %cst_94 = arith.constant dense<0.000000e+00> : vector<2x32xf32>
    %430 = tpu.matmul %289, %406, %cst_94 {dimension_numbers = #tpu.dot_dimension_numbers<[1], [0], [0], [1], [0, 0, 1, 1], [], []>} : vector<2x32xf32>, vector<32x32xf32>, vector<2x32xf32> -> vector<2x32xf32>
    %431 = vector.broadcast %407 : vector<1x32xf32> to vector<2x32xf32>
    %432 = arith.addf %430, %431 : vector<2x32xf32>
    %433 = math.tanh %432 : vector<2x32xf32>
    %434 = vector.broadcast %408 : vector<1x32xf32> to vector<2x32xf32>
    %435 = arith.mulf %433, %434 : vector<2x32xf32>
    %cst_95 = arith.constant dense<0.000000e+00> : vector<2xf32>
    %436 = vector.multi_reduction <add>, %435, %cst_95 [1] : vector<2x32xf32> to vector<2xf32>
    %437 = vector.shape_cast %436 : vector<2xf32> to vector<2x1xf32>
    %438 = vector.broadcast %409 : vector<1x1xf32> to vector<2x1xf32>
    %439 = arith.addf %437, %438 : vector<2x1xf32>
    %cst_96 = arith.constant dense<0.000000e+00> : vector<2x32xf32>
    %440 = tpu.matmul %318, %406, %cst_96 {dimension_numbers = #tpu.dot_dimension_numbers<[1], [0], [0], [1], [0, 0, 1, 1], [], []>} : vector<2x32xf32>, vector<32x32xf32>, vector<2x32xf32> -> vector<2x32xf32>
    %441 = vector.broadcast %407 : vector<1x32xf32> to vector<2x32xf32>
    %442 = arith.addf %440, %441 : vector<2x32xf32>
    %443 = math.tanh %442 : vector<2x32xf32>
    %444 = vector.broadcast %408 : vector<1x32xf32> to vector<2x32xf32>
    %445 = arith.mulf %443, %444 : vector<2x32xf32>
    %cst_97 = arith.constant dense<0.000000e+00> : vector<2xf32>
    %446 = vector.multi_reduction <add>, %445, %cst_97 [1] : vector<2x32xf32> to vector<2xf32>
    %447 = vector.shape_cast %446 : vector<2xf32> to vector<2x1xf32>
    %448 = vector.broadcast %409 : vector<1x1xf32> to vector<2x1xf32>
    %449 = arith.addf %447, %448 : vector<2x1xf32>
    %cst_98 = arith.constant dense<0.000000e+00> : vector<2x32xf32>
    %450 = tpu.matmul %347, %406, %cst_98 {dimension_numbers = #tpu.dot_dimension_numbers<[1], [0], [0], [1], [0, 0, 1, 1], [], []>} : vector<2x32xf32>, vector<32x32xf32>, vector<2x32xf32> -> vector<2x32xf32>
    %451 = vector.broadcast %407 : vector<1x32xf32> to vector<2x32xf32>
    %452 = arith.addf %450, %451 : vector<2x32xf32>
    %453 = math.tanh %452 : vector<2x32xf32>
    %454 = vector.broadcast %408 : vector<1x32xf32> to vector<2x32xf32>
    %455 = arith.mulf %453, %454 : vector<2x32xf32>
    %cst_99 = arith.constant dense<0.000000e+00> : vector<2xf32>
    %456 = vector.multi_reduction <add>, %455, %cst_99 [1] : vector<2x32xf32> to vector<2xf32>
    %457 = vector.shape_cast %456 : vector<2xf32> to vector<2x1xf32>
    %458 = vector.broadcast %409 : vector<1x1xf32> to vector<2x1xf32>
    %459 = arith.addf %457, %458 : vector<2x1xf32>
    %cst_100 = arith.constant dense<0.000000e+00> : vector<2x32xf32>
    %460 = tpu.matmul %376, %406, %cst_100 {dimension_numbers = #tpu.dot_dimension_numbers<[1], [0], [0], [1], [0, 0, 1, 1], [], []>} : vector<2x32xf32>, vector<32x32xf32>, vector<2x32xf32> -> vector<2x32xf32>
    %461 = vector.broadcast %407 : vector<1x32xf32> to vector<2x32xf32>
    %462 = arith.addf %460, %461 : vector<2x32xf32>
    %463 = math.tanh %462 : vector<2x32xf32>
    %464 = vector.broadcast %408 : vector<1x32xf32> to vector<2x32xf32>
    %465 = arith.mulf %463, %464 : vector<2x32xf32>
    %cst_101 = arith.constant dense<0.000000e+00> : vector<2xf32>
    %466 = vector.multi_reduction <add>, %465, %cst_101 [1] : vector<2x32xf32> to vector<2xf32>
    %467 = vector.shape_cast %466 : vector<2xf32> to vector<2x1xf32>
    %468 = vector.broadcast %409 : vector<1x1xf32> to vector<2x1xf32>
    %469 = arith.addf %467, %468 : vector<2x1xf32>
    %cst_102 = arith.constant dense<0.000000e+00> : vector<2x32xf32>
    %470 = tpu.matmul %405, %406, %cst_102 {dimension_numbers = #tpu.dot_dimension_numbers<[1], [0], [0], [1], [0, 0, 1, 1], [], []>} : vector<2x32xf32>, vector<32x32xf32>, vector<2x32xf32> -> vector<2x32xf32>
    %471 = vector.broadcast %407 : vector<1x32xf32> to vector<2x32xf32>
    %472 = arith.addf %470, %471 : vector<2x32xf32>
    %473 = math.tanh %472 : vector<2x32xf32>
    %474 = vector.broadcast %408 : vector<1x32xf32> to vector<2x32xf32>
    %475 = arith.mulf %473, %474 : vector<2x32xf32>
    %cst_103 = arith.constant dense<0.000000e+00> : vector<2xf32>
    %476 = vector.multi_reduction <add>, %475, %cst_103 [1] : vector<2x32xf32> to vector<2xf32>
    %477 = vector.shape_cast %476 : vector<2xf32> to vector<2x1xf32>
    %478 = vector.broadcast %409 : vector<1x1xf32> to vector<2x1xf32>
    %479 = arith.addf %477, %478 : vector<2x1xf32>
    %480 = arith.maximumf %419, %429 : vector<2x1xf32>
    %481 = arith.maximumf %480, %439 : vector<2x1xf32>
    %482 = arith.maximumf %481, %449 : vector<2x1xf32>
    %483 = arith.maximumf %482, %459 : vector<2x1xf32>
    %484 = arith.maximumf %483, %469 : vector<2x1xf32>
    %485 = arith.maximumf %484, %479 : vector<2x1xf32>
    %486 = arith.subf %419, %485 : vector<2x1xf32>
    %487 = math.exp %486 : vector<2x1xf32>
    %488 = arith.subf %429, %485 : vector<2x1xf32>
    %489 = math.exp %488 : vector<2x1xf32>
    %490 = arith.subf %439, %485 : vector<2x1xf32>
    %491 = math.exp %490 : vector<2x1xf32>
    %492 = arith.subf %449, %485 : vector<2x1xf32>
    %493 = math.exp %492 : vector<2x1xf32>
    %494 = arith.subf %459, %485 : vector<2x1xf32>
    %495 = math.exp %494 : vector<2x1xf32>
    %496 = arith.subf %469, %485 : vector<2x1xf32>
    %497 = math.exp %496 : vector<2x1xf32>
    %498 = arith.subf %479, %485 : vector<2x1xf32>
    %499 = math.exp %498 : vector<2x1xf32>
    %500 = arith.addf %487, %489 : vector<2x1xf32>
    %501 = arith.addf %500, %491 : vector<2x1xf32>
    %502 = arith.addf %501, %493 : vector<2x1xf32>
    %503 = arith.addf %502, %495 : vector<2x1xf32>
    %504 = arith.addf %503, %497 : vector<2x1xf32>
    %505 = arith.addf %504, %499 : vector<2x1xf32>
    %506 = vector.broadcast %487 : vector<2x1xf32> to vector<2x32xf32>
    %507 = arith.mulf %506, %231 : vector<2x32xf32>
    %508 = vector.broadcast %489 : vector<2x1xf32> to vector<2x32xf32>
    %509 = arith.mulf %508, %260 : vector<2x32xf32>
    %510 = arith.addf %507, %509 : vector<2x32xf32>
    %511 = vector.broadcast %491 : vector<2x1xf32> to vector<2x32xf32>
    %512 = arith.mulf %511, %289 : vector<2x32xf32>
    %513 = arith.addf %510, %512 : vector<2x32xf32>
    %514 = vector.broadcast %493 : vector<2x1xf32> to vector<2x32xf32>
    %515 = arith.mulf %514, %318 : vector<2x32xf32>
    %516 = arith.addf %513, %515 : vector<2x32xf32>
    %517 = vector.broadcast %495 : vector<2x1xf32> to vector<2x32xf32>
    %518 = arith.mulf %517, %347 : vector<2x32xf32>
    %519 = arith.addf %516, %518 : vector<2x32xf32>
    %520 = vector.broadcast %497 : vector<2x1xf32> to vector<2x32xf32>
    %521 = arith.mulf %520, %376 : vector<2x32xf32>
    %522 = arith.addf %519, %521 : vector<2x32xf32>
    %523 = vector.broadcast %499 : vector<2x1xf32> to vector<2x32xf32>
    %524 = arith.mulf %523, %405 : vector<2x32xf32>
    %525 = arith.addf %522, %524 : vector<2x32xf32>
    %526 = vector.broadcast %505 : vector<2x1xf32> to vector<2x32xf32>
    %527 = arith.divf %525, %526 : vector<2x32xf32>
    %c0_104 = arith.constant 0 : index
    %c0_105 = arith.constant 0 : index
    %528 = vector.load %arg13[%c0_104, %c0_105] : memref<32x4xf32, #tpu.memory_space<vmem>>, vector<32x4xf32>
    %cst_106 = arith.constant dense<0.000000e+00> : vector<2x4xf32>
    %529 = tpu.matmul %527, %528, %cst_106 {dimension_numbers = #tpu.dot_dimension_numbers<[1], [0], [0], [1], [0, 0, 1, 1], [], []>} : vector<2x32xf32>, vector<32x4xf32>, vector<2x4xf32> -> vector<2x4xf32>
    %c0_107 = arith.constant 0 : index
    %c0_108 = arith.constant 0 : index
    %530 = vector.load %arg14[%c0_107, %c0_108] : memref<1x4xf32, #tpu.memory_space<vmem>>, vector<1x4xf32>
    %531 = vector.broadcast %530 : vector<1x4xf32> to vector<2x4xf32>
    %532 = arith.addf %529, %531 : vector<2x4xf32>
    %c0_109 = arith.constant 0 : index
    %c0_110 = arith.constant 0 : index
    %533 = vector.load %arg15[%c0_109, %c0_110] : memref<2x4xf32, #tpu.memory_space<vmem>>, vector<2x4xf32>
    tpu.vector_store %arg15[%c0_109, %c0_110], %532 {strides = array<i32>} : memref<2x4xf32, #tpu.memory_space<vmem>>, vector<2x4xf32>,
    return
  }
}

</mosaic_0001>

<bundles_post_ra>
// kernel: crnn_forward.1
= control target key start
LH: loop header
LB: loop body
LE: loop exit
PB: predicated region body
PF: predicated region fallthrough
CT: control target
= control target key end

     0   :  { %s2322_s0 = inlined_call_operand.vmem [shape: f32[14,112], index: 0, kind: input, shape index: {}]   ;;  %s2323_s1 = inlined_call_operand.vmem [shape: f32[112,96], index: 1, kind: input, shape index: {}]   ;;  %s2324_s2 = inlined_call_operand.vmem [shape: f32[1,96], index: 2, kind: input, shape index: {}]   ;;  %s2325_s3 = inlined_call_operand.vmem [shape: f32[32,96], index: 3, kind: input, shape index: {}]   ;;  %s2326_s4 = inlined_call_operand.vmem [shape: f32[1,32], index: 4, kind: input, shape index: {}]   ;;  %s2327_s5 = inlined_call_operand.vmem [shape: f32[32,96], index: 5, kind: input, shape index: {}]   ;;  %s2328_s6 = inlined_call_operand.vmem [shape: f32[1,96], index: 6, kind: input, shape index: {}]   ;;  %s2329_s7 = inlined_call_operand.vmem [shape: f32[32,96], index: 7, kind: input, shape index: {}]   ;;  %s2330_s8 = inlined_call_operand.vmem [shape: f32[1,32], index: 8, kind: input, shape index: {}]   ;;  %s2331_s9 = inlined_call_operand.vmem [shape: f32[32,32], index: 9, kind: input, shape index: {}]   ;;  %s2332_s10 = inlined_call_operand.vmem [shape: f32[1,32], index: 10, kind: input, shape index: {}]   ;;  %s2333_s11 = inlined_call_operand.vmem [shape: f32[1,32], index: 11, kind: input, shape index: {}]   ;;  %s2334_s12 = inlined_call_operand.<no memory space> [shape: f32[1,1], index: 12, kind: input, shape index: {}]   ;;  %s2335_s13 = inlined_call_operand.vmem [shape: f32[32,4], index: 13, kind: input, shape index: {}]   ;;  %s2336_s14 = inlined_call_operand.vmem [shape: f32[1,4], index: 14, kind: input, shape index: {}]   ;;  %s2337_s15 = inlined_call_operand.hbm [shape: f32[2,4], index: 15, kind: output, shape index: {}]  }
   0x1   :  { %v20_v0 = vstv %s2334_s12 }
   0x2   :  { %21 = vst [vmem:[#allocation2] sm:$0x1] %v20_v0 }
   0x3   :  { %v68_v1 = vld [vmem:[%s2323_s1 + $0x68] sm:$0xff]  ;;  %v106_v2 = vld [vmem:[%s2325_s3 + $0x18] sm:$0xff]  ;;  %v67_v3 = vld [vmem:[%s2323_s1 + $0x60] sm:$0xff]  ;;  %s1771_s26 = smov 64   ;;  %v1772_v12 = vmov 0.0  }
   0x4   :  { %82 = vmatpush.msra.mxu0 %v68_v1  ;;  %124 = vmatpush.msra.mxu1 %v106_v2  ;;  %v105_v4 = vld [vmem:[%s2325_s3 + $0x10] sm:$0xff]  ;;  %v66_v5 = vld [vmem:[%s2323_s1 + $0x58] sm:$0xff]  ;;  %v104_v6 = vld [vmem:[%s2325_s3 + $0x8] sm:$0xff] }
   0x5   :  { %194 = vmatpush.msra.mxu2 %v106_v2  ;;  %266 = vmatpush.msra.mxu3 %v106_v2  ;;  %v65_v7 = vld [vmem:[%s2323_s1 + $0x50] sm:$0xff]  ;;  %v103_v8 = vld [vmem:[%s2325_s3] sm:$0xff]  ;;  %v64_v10 = vld [vmem:[%s2323_s1 + $0x48] sm:$0xff] }
   0x6   :  { %83 = vmatpush.msra.mxu0 %v67_v3  ;;  %125 = vmatpush.msra.mxu1 %v105_v4  ;;  %v1623_v9 = vld [vmem:[%s2326_s4] ss:$0 sm:$0xff] }
   0x7   :  { %195 = vmatpush.msra.mxu2 %v105_v4  ;;  %267 = vmatpush.msra.mxu3 %v105_v4  ;;  %v63_v11 = vld [vmem:[%s2323_s1 + $0x40] sm:$0xff] }
   0x8   :  { %84 = vmatpush.msra.mxu0 %v66_v5  ;;  %126 = vmatpush.msra.mxu1 %v104_v6 }
   0x9   :  { %154 = vrot.lane.b32.xlu0 %v1623_v9, %s1771_s26  ;;  %196 = vmatpush.msra.mxu2 %v104_v6 }
   0xa   :  { %85 = vmatpush.msra.mxu0 %v65_v7  ;;  %127 = vmatpush.msra.mxu1 %v103_v8 }
   0xb   :  { %128 = vmatmul.f32.vlgmr.msra.gmra.mxu1 %v1772_v12  ;;  %197 = vmatpush.msra.mxu2 %v103_v8 }
   0xc   :  { %86 = vmatpush.msra.mxu0 %v64_v10  ;;  %268 = vmatpush.msra.mxu3 %v104_v6 }
   0xd   :  { %22 = vsyncpa [#allocation4], 0  ;;  %v62_v13 = vld [vmem:[%s2323_s1 + $0x38] sm:$0xff]  ;;  %338 = vmatpush.msrb.mxu1 %v106_v2  ;;  %410 = vmatpush.msrb.mxu2 %v106_v2  ;;  %v61_v14 = vld [vmem:[%s2323_s1 + $0x30] sm:$0xff]  ;;  %vm73_vm0 = vcmask 916480   ;;  %vm108_vm5 = vcmask 261120  }
   0xe   :  { %87 = vmatpush.msra.mxu0 %v63_v11  ;;  %269 = vmatpush.msra.mxu3 %v103_v8  ;;  %v60_v15 = vld [vmem:[%s2323_s1 + $0x28] sm:$0xff]  ;;  %v59_v16 = vld [vmem:[%s2323_s1 + $0x20] sm:$0xff]  ;;  %v58_v17 = vld [vmem:[%s2323_s1 + $0x18] sm:$0xff]  ;;  %s1775_s25 = smov [#allocation3]  }
   0xf   :  { %339 = vmatpush.msrb.mxu1 %v105_v4  ;;  %411 = vmatpush.msrb.mxu2 %v105_v4  ;;  %v57_v18 = vld [vmem:[%s2323_s1 + $0x10] sm:$0xff]  ;;  %v56_v19 = vld [vmem:[%s2323_s1 + $0x8] sm:$0xff]  ;;  %v55_v20 = vld [vmem:[%s2323_s1] sm:$0xff]  ;;  %s1773_s1 = smov 96   ;;  %s1561_s3 = sshll.u32 %s1775_s25, 4  ;;  %s1562_s3 = int_to_ptr.vmem [resolvable:$true] %s1561_s3 }
  0x10   :  { %88 = vmatpush.msra.mxu0 %v62_v13  ;;  %476 = vmatpush.msrb.mxu3 %v106_v2  ;;  %v53_v21 = vld [vmem:[%s2322_s0] sm:$0xff] }
  0x11   :  { %340 = vmatpush.msrb.mxu1 %v104_v6  ;;  %412 = vmatpush.msrb.mxu2 %v104_v6  ;;  %v1929_v25 = vld [vmem:[%s2324_s2] ss:$0 sm:$0xff] }
  0x12   :  { %89 = vmatpush.msra.mxu0 %v61_v14  ;;  %477 = vmatpush.msrb.mxu3 %v105_v4 }
  0x13   :  { %341 = vmatpush.msrb.mxu1 %v103_v8  ;;  %413 = vmatpush.msrb.mxu2 %v103_v8 }
  0x14   :  { %90 = vmatpush.msra.mxu0 %v60_v15  ;;  %478 = vmatpush.msrb.mxu3 %v104_v6 }
  0x15   :  { %548 = vmatpush.msra.mxu1 %v106_v2 }
  0x16   :  { %91 = vmatpush.msra.mxu0 %v59_v16  ;;  %479 = vmatpush.msrb.mxu3 %v103_v8 }
  0x17   :  { %549 = vmatpush.msra.mxu1 %v105_v4 }
  0x18   :  { %92 = vmatpush.msra.mxu0 %v58_v17 }
  0x19   :  { %550 = vmatpush.msra.mxu1 %v104_v6 }
  0x1a   :  { %93 = vmatpush.msra.mxu0 %v57_v18 }
  0x1b   :  { %551 = vmatpush.msra.mxu1 %v103_v8 }
  0x1c   :  { %94 = vmatpush.msra.mxu0 %v56_v19 }
  0x1e   :  { %95 = vmatpush.msra.mxu0 %v55_v20 }
  0x1f   :  { %1572 = vmatmul.msk.f32.vlgmr.msra.gmra.mxu0 %vm73_vm0, %v53_v21 }
  0x7b   :  { %v1922_v22 = vpop.permute.xlu0 %154 }
  0x88   :  { %v129_v23 = vpop.f32.mrf.mxu1 }
  0x89   :  { %v157_v24 = vadd.f32 %v1922_v22, %v129_v23 }
  0x8b   :  { %159 = vrot.lane.b32.xlu0 %v157_v24, %s1771_s26 }
  0x9c   :  { %v97_v26 = vpop.f32.mrf.mxu0 }
  0x9d   :  { %v1932_v27 = vadd.f32 %v1929_v25, %v97_v26 }
  0x9f   :  { %v132_v28 = vadd.f32 %v129_v23, %v1932_v27 }
  0xa1   :  { %v1574_v29 = vmul.f32 -1.442695, %v132_v28 }
  0xa3   :  { %1631 = vpow2.f32 %v1574_v29 }
  0xa9   :  { %v1632_v30 = vpop.eup %1631 }
  0xaa   :  { %v136_v31 = vadd.f32 1.0, %v1632_v30 }
  0xac   :  { %1633 = vrcp.f32 %v136_v31  ;;  %v148_v37 = vand.u32 2147483648, %v136_v31  ;;  %vm142_vm2 = vweird.f32 %v136_v31  ;;  %v146_v38 = vand.u32 2147483647, %v136_v31 }
  0xae   :  { %v149_v40 = vor.u32 1.1754944e-38, %v148_v37  ;;  %vm147_vm4 = vcmp.eq.f32.partialorder %v146_v38, 8.507059e+37 }
  0xb2   :  { %v1634_v32 = vpop.eup %1633 }
  0xb3   :  { %v138_v33 = vmul.f32 %v1634_v32, %v136_v31  ;;  %vm143_vm1 = vweird.f32 %v1634_v32 }
  0xb4   :  { %vm144_vm3 = vmor %vm142_vm2, %vm143_vm1 }
  0xb5   :  { %v139_v34 = vsub.f32 1.0, %v138_v33 }
  0xb7   :  { %v140_v35 = vmul.f32 %v1634_v32, %v139_v34 }
  0xb9   :  { %v141_v36 = vadd.f32 %v1634_v32, %v140_v35 }
  0xbb   :  { %v145_v39 = vsel %vm144_vm3, %v1634_v32, %v141_v36 }
  0xbc   :  { %v150_v42 = vsel %vm147_vm4, %v149_v40, %v145_v39 }
  0xbd   :  { %v169_v47 = vsub.f32 1.0, %v150_v42  ;;  %v175_v50 = vmul.f32 0.0, %v150_v42 }
  0xfd   :  { %v160_v41 = vpop.permute.xlu0 %159 }
  0xfe   :  { %v162_v43 = vmul.f32 %v160_v41, %v150_v42 }
 0x100   :  { %164 = vrot.lane.b32.xlu1 %v162_v43, %s1771_s26 }
 0x172   :  { %v165_v44 = vpop.permute.xlu1 %164 }
 0x173   :  { %v167_v45 = vadd.f32 %v165_v44, %v1932_v27 }
 0x175   :  { %1635 = vtanh.f32 %v167_v45 }
 0x17b   :  { %v1636_v46 = vpop.eup %1635 }
 0x17c   :  { %171 = vrot.lane.b32.xlu1 %v1636_v46, %s1773_s1 }
 0x1ee   :  { %v172_v48 = vpop.permute.xlu1 %171 }
 0x1ef   :  { %v174_v49 = vmul.f32 %v172_v48, %v169_v47 }
 0x1f1   :  { %v176_v51 = vadd.f32 %v175_v50, %v174_v49 }
 0x1f3   :  { %178 = vrot.lane.b32.xlu2 %v176_v51, %s1773_s1  ;;  %v244_v5 = vrot.slane %v176_v51, 6 }
 0x24d   :  { %v1939_v52 = vpop.permute.xlu2 %178 }
 0x24e   :  { %1575 = vmatmul.msk.f32.vlgmr.msra.gmra.mxu2 %vm108_vm5, %v1939_v52 }
 0x2d1   :  { %v199_v53 = vpop.f32.mrf.mxu2 }
 0x2d2   :  { %v203_v54 = vrot.slane %v199_v53, 6  ;;  %v225_v55 = vadd.f32 %v199_v53, %v1922_v22 }
 0x2d4   :  { %v205_v56 = vadd.f32 %v203_v54, %v1932_v27  ;;  %v227_v57 = vrot.slane %v225_v55, 6 }
 0x2d6   :  { %v1576_v58 = vmul.f32 -1.442695, %v205_v56  ;;  %228 = vrot.lane.b32.xlu2 %v227_v57, %s1771_s26 }
 0x2d8   :  { %1637 = vpow2.f32 %v1576_v58 }
 0x2de   :  { %v1638_v59 = vpop.eup %1637 }
 0x2df   :  { %v209_v60 = vadd.f32 1.0, %v1638_v59 }
 0x2e1   :  { %1639 = vrcp.f32 %v209_v60  ;;  %v221_v0 = vand.u32 2147483648, %v209_v60  ;;  %v219_v2 = vand.u32 2147483647, %v209_v60  ;;  %vm215_vm7 = vweird.f32 %v209_v60 }
 0x2e3   :  { %v222_v4 = vor.u32 1.1754944e-38, %v221_v0  ;;  %vm220_vm9 = vcmp.eq.f32.partialorder %v219_v2, 8.507059e+37 }
 0x2e7   :  { %v1640_v61 = vpop.eup %1639 }
 0x2e8   :  { %v211_v62 = vmul.f32 %v1640_v61, %v209_v60  ;;  %vm216_vm6 = vweird.f32 %v1640_v61 }
 0x2e9   :  { %vm217_vm8 = vmor %vm215_vm7, %vm216_vm6 }
 0x2ea   :  { %v212_v63 = vsub.f32 1.0, %v211_v62 }
 0x2ec   :  { %v213_v1 = vmul.f32 %v1640_v61, %v212_v63 }
 0x2ee   :  { %v214_v3 = vadd.f32 %v1640_v61, %v213_v1 }
 0x2f0   :  { %v218_v6 = vsel %vm217_vm8, %v1640_v61, %v214_v3 }
 0x2f1   :  { %v223_v7 = vsel %vm220_vm9, %v222_v4, %v218_v6 }
 0x2f2   :  { %v246_v8 = vmul.f32 %v244_v5, %v223_v7  ;;  %v238_v15 = vsub.f32 1.0, %v223_v7 }
 0x330   :  { %v229_v9 = vpop.permute.xlu2 %228 }
 0x331   :  { %v231_v10 = vmul.f32 %v229_v9, %v223_v7 }
 0x333   :  { %233 = vrot.lane.b32.xlu0 %v231_v10, %s1771_s26 }
 0x3a5   :  { %v234_v11 = vpop.permute.xlu0 %233 }
 0x3a6   :  { %v236_v13 = vadd.f32 %v234_v11, %v1932_v27 }
 0x3a8   :  { %1641 = vtanh.f32 %v236_v13 }
 0x3ae   :  { %v1642_v14 = vpop.eup %1641 }
 0x3af   :  { %240 = vrot.lane.b32.xlu1 %v1642_v14, %s1773_s1 }
 0x421   :  { %v241_v16 = vpop.permute.xlu1 %240 }
 0x422   :  { %v243_v17 = vmul.f32 %v241_v16, %v238_v15 }
 0x424   :  { %v247_v18 = vadd.f32 %v246_v8, %v243_v17 }
 0x426   :  { %v249_v19 = vrot.slane %v247_v18, 2  ;;  %v316_v47 = vrot.slane %v247_v18, 6 }
 0x428   :  { %250 = vrot.lane.b32.xlu2 %v249_v19, %s1773_s1 }
 0x482   :  { %v1950_v20 = vpop.permute.xlu2 %250 }
 0x483   :  { %1577 = vmatmul.msk.f32.vlgmr.msra.gmra.mxu3 %vm108_vm5, %v1950_v20 }
 0x506   :  { %v271_v21 = vpop.f32.mrf.mxu3 }
 0x507   :  { %v297_v23 = vadd.f32 %v271_v21, %v1922_v22  ;;  %v275_v26 = vrot.slane %v271_v21, 4 }
 0x509   :  { %v299_v24 = vrot.slane %v297_v23, 4  ;;  %v277_v28 = vadd.f32 %v275_v26, %v1932_v27  ;;  %v1978_v26 = vld [vmem:[%s2327_s5 + $0x18] sm:$0xff] }
 0x50a   :  { %627 = vmatpush.msra.mxu2 %v1978_v26  ;;  %967 = vmatpush.msrb.mxu0 %v1978_v26 }
 0x50b   :  { %300 = vrot.lane.b32.xlu0 %v299_v24, %s1771_s26  ;;  %v1578_v29 = vmul.f32 -1.442695, %v277_v28  ;;  %v54_v28 = vld [vmem:[%s2322_s0 + $0x8] sm:$0x3f] }
 0x50c   :  { %1573 = vmatmul.msk.f32.gmra.mxu0 %vm73_vm0, %v54_v28 }
 0x50d   :  { %1643 = vpow2.f32 %v1578_v29  ;;  %v1993_v29 = vld [vmem:[%s2327_s5 + $0x8] sm:$0xff] }
 0x513   :  { %v1644_v30 = vpop.eup %1643 }
 0x514   :  { %v281_v31 = vadd.f32 1.0, %v1644_v30  ;;  %v2001_v30 = vld [vmem:[%s2327_s5] sm:$0xff] }
 0x516   :  { %1645 = vrcp.f32 %v281_v31  ;;  %v293_v37 = vand.u32 2147483648, %v281_v31  ;;  %vm287_vm11 = vweird.f32 %v281_v31  ;;  %v291_v38 = vand.u32 2147483647, %v281_v31 }
 0x518   :  { %v294_v40 = vor.u32 1.1754944e-38, %v293_v37  ;;  %vm292_vm13 = vcmp.eq.f32.partialorder %v291_v38, 8.507059e+37 }
 0x51c   :  { %v1646_v32 = vpop.eup %1645 }
 0x51d   :  { %v283_v33 = vmul.f32 %v1646_v32, %v281_v31  ;;  %vm288_vm10 = vweird.f32 %v1646_v32 }
 0x51e   :  { %vm289_vm12 = vmor %vm287_vm11, %vm288_vm10 }
 0x51f   :  { %v284_v34 = vsub.f32 1.0, %v283_v33 }
 0x521   :  { %v285_v35 = vmul.f32 %v1646_v32, %v284_v34 }
 0x523   :  { %v286_v36 = vadd.f32 %v1646_v32, %v285_v35 }
 0x525   :  { %v290_v39 = vsel %vm289_vm12, %v1646_v32, %v286_v36 }
 0x526   :  { %v295_v42 = vsel %vm292_vm13, %v294_v40, %v290_v39 }
 0x527   :  { %v310_v48 = vsub.f32 1.0, %v295_v42  ;;  %v318_v50 = vmul.f32 %v316_v47, %v295_v42 }
 0x57d   :  { %v301_v41 = vpop.permute.xlu0 %300 }
 0x57e   :  { %v303_v43 = vmul.f32 %v301_v41, %v295_v42 }
 0x580   :  { %305 = vrot.lane.b32.xlu1 %v303_v43, %s1771_s26 }
 0x589   :  { %v100_v34 = vpop.f32.mrf.mxu0 }
 0x58a   :  { %v2024_v35 = vadd.f32 %v1929_v25, %v100_v34 }
 0x5f2   :  { %v306_v44 = vpop.permute.xlu1 %305 }
 0x5f3   :  { %v308_v45 = vadd.f32 %v306_v44, %v1932_v27 }
 0x5f5   :  { %1647 = vtanh.f32 %v308_v45 }
 0x5fb   :  { %v1648_v46 = vpop.eup %1647 }
 0x5fc   :  { %312 = vrot.lane.b32.xlu2 %v1648_v46, %s1773_s1 }
 0x656   :  { %v313_v49 = vpop.permute.xlu2 %312 }
 0x657   :  { %v315_v51 = vmul.f32 %v313_v49, %v310_v48 }
 0x659   :  { %v319_v53 = vadd.f32 %v318_v50, %v315_v51 }
 0x65b   :  { %v321_v54 = vrot.slane %v319_v53, 4  ;;  %v388_v16 = vrot.slane %v319_v53, 6 }
 0x65d   :  { %322 = vrot.lane.b32.xlu0 %v321_v54, %s1773_s1 }
 0x6cf   :  { %v1961_v55 = vpop.permute.xlu0 %322 }
 0x6d0   :  { %1579 = vmatmul.msk.f32.vlgmr.msrb.gmra.mxu1 %vm108_vm5, %v1961_v55 }
 0x6d1   :  { %712 = vmatpush.msrb.mxu1 %v1978_v26 }
 0x74d   :  { %v343_v56 = vpop.f32.mrf.mxu1 }
 0x74e   :  { %v369_v57 = vadd.f32 %v343_v56, %v1922_v22  ;;  %v347_v59 = vrot.slane %v343_v56, 2 }
 0x750   :  { %v371_v58 = vrot.slane %v369_v57, 2  ;;  %v349_v60 = vadd.f32 %v347_v59, %v1932_v27 }
 0x752   :  { %372 = vrot.lane.b32.xlu1 %v371_v58, %s1771_s26  ;;  %v1580_v61 = vmul.f32 -1.442695, %v349_v60  ;;  %v2037_v60 = vld [vmem:[%s2329_s7 + $0x18] sm:$0xff] }
 0x753   :  { %647 = vmatpush.msra.mxu3 %v2037_v60 }
 0x754   :  { %1649 = vpow2.f32 %v1580_v61  ;;  %v2042_v61 = vld [vmem:[%s2329_s7 + $0x10] sm:$0xff] }
 0x755   :  { %648 = vmatpush.msra.mxu3 %v2042_v61 }
 0x75a   :  { %v1650_v62 = vpop.eup %1649 }
 0x75b   :  { %v353_v63 = vadd.f32 1.0, %v1650_v62  ;;  %v2049_v62 = vld [vmem:[%s2329_s7 + $0x8] sm:$0xff] }
 0x75c   :  { %649 = vmatpush.msra.mxu3 %v2049_v62 }
 0x75d   :  { %1651 = vrcp.f32 %v353_v63  ;;  %v365_v5 = vand.u32 2147483648, %v353_v63  ;;  %vm359_vm15 = vweird.f32 %v353_v63  ;;  %v363_v6 = vand.u32 2147483647, %v353_v63 }
 0x75f   :  { %v366_v8 = vor.u32 1.1754944e-38, %v365_v5  ;;  %vm364_vm2 = vcmp.eq.f32.partialorder %v363_v6, 8.507059e+37 }
 0x763   :  { %v1652_v0 = vpop.eup %1651 }
 0x764   :  { %v355_v1 = vmul.f32 %v1652_v0, %v353_v63  ;;  %vm360_vm14 = vweird.f32 %v1652_v0  ;;  %v2056_v63 = vld [vmem:[%s2329_s7] sm:$0xff]  ;;  %s1563_s7 = sshll.u32 %s2337_s15, 4  ;;  %s1564_s7 = int_to_ptr.hbm [resolvable:$true] %s1563_s7 }
 0x765   :  { %vm361_vm1 = vmor %vm359_vm15, %vm360_vm14  ;;  %650 = vmatpush.msra.mxu3 %v2056_v63 }
 0x766   :  { %v356_v2 = vsub.f32 1.0, %v355_v1 }
 0x768   :  { %v357_v3 = vmul.f32 %v1652_v0, %v356_v2 }
 0x76a   :  { %v358_v4 = vadd.f32 %v1652_v0, %v357_v3 }
 0x76c   :  { %v362_v7 = vsel %vm361_vm1, %v1652_v0, %v358_v4  ;;  %v1626_v0 = vld [vmem:[%s2330_s8] ss:$0 sm:$0xff] }
 0x76d   :  { %v367_v10 = vsel %vm364_vm2, %v366_v8, %v362_v7 }
 0x76e   :  { %v382_v17 = vsub.f32 1.0, %v367_v10  ;;  %v390_v19 = vmul.f32 %v388_v16, %v367_v10 }
 0x7c4   :  { %v373_v9 = vpop.permute.xlu1 %372 }
 0x7c5   :  { %v375_v11 = vmul.f32 %v373_v9, %v367_v10 }
 0x7c7   :  { %377 = vrot.lane.b32.xlu2 %v375_v11, %s1771_s26 }
 0x821   :  { %v378_v13 = vpop.permute.xlu2 %377 }
 0x822   :  { %v380_v14 = vadd.f32 %v378_v13, %v1932_v27  ;;  %v1983_v27 = vld [vmem:[%s2327_s5 + $0x10] sm:$0xff] }
 0x823   :  { %628 = vmatpush.msra.mxu2 %v1983_v27  ;;  %968 = vmatpush.msrb.mxu0 %v1983_v27 }
 0x824   :  { %1653 = vtanh.f32 %v380_v14  ;;  %713 = vmatpush.msrb.mxu1 %v1983_v27 }
 0x825   :  { %629 = vmatpush.msra.mxu2 %v1993_v29  ;;  %969 = vmatpush.msrb.mxu0 %v1993_v29 }
 0x826   :  { %714 = vmatpush.msrb.mxu1 %v1993_v29 }
 0x827   :  { %630 = vmatpush.msra.mxu2 %v2001_v30  ;;  %970 = vmatpush.msrb.mxu0 %v2001_v30 }
 0x828   :  { %715 = vmatpush.msrb.mxu1 %v2001_v30 }
 0x829   :  { %1143 = vmatpush.msra.mxu0 %v1978_v26 }
 0x82a   :  { %v1654_v15 = vpop.eup %1653 }
 0x82b   :  { %384 = vrot.lane.b32.xlu0 %v1654_v15, %s1773_s1  ;;  %1144 = vmatpush.msra.mxu0 %v1983_v27 }
 0x82d   :  { %1145 = vmatpush.msra.mxu0 %v1993_v29 }
 0x82f   :  { %1146 = vmatpush.msra.mxu0 %v2001_v30 }
 0x89d   :  { %v385_v18 = vpop.permute.xlu0 %384 }
 0x89e   :  { %v387_v21 = vmul.f32 %v385_v18, %v382_v17 }
 0x8a0   :  { %v1971_v23 = vadd.f32 %v390_v19, %v387_v21 }
 0x8a2   :  { %v393_v24 = vrot.slane %v1971_v23, 6 }
 0x8a4   :  { %394 = vrot.lane.b32.xlu1 %v393_v24, %s1773_s1 }
 0x916   :  { %v2015_v31 = vpop.permute.xlu1 %394 }
 0x917   :  { %1581 = vmatmul.msk.f32.vlgmr.msrb.gmra.mxu2 %vm108_vm5, %v2015_v31 }
 0x918   :  { %737 = vmatpush.msrb.mxu2 %v2037_v60 }
 0x91a   :  { %738 = vmatpush.msrb.mxu2 %v2042_v61 }
 0x91c   :  { %739 = vmatpush.msrb.mxu2 %v2049_v62 }
 0x91e   :  { %740 = vmatpush.msrb.mxu2 %v2056_v63 }
 0x91f   :  { %1587 = vmatmul.msk.f32.vlgmr.msra.gmra.mxu2 %vm108_vm5, %v1939_v52 }
 0x920   :  { %882 = vmatpush.msra.mxu2 %v1978_v26 }
 0x922   :  { %883 = vmatpush.msra.mxu2 %v1983_v27 }
 0x924   :  { %884 = vmatpush.msra.mxu2 %v1993_v29 }
 0x926   :  { %885 = vmatpush.msra.mxu2 %v2001_v30 }
 0x99a   :  { %v415_v32 = vpop.f32.mrf.mxu2 }
 0x99b   :  { %v438_v33 = vadd.f32 %v415_v32, %v1922_v22  ;;  %v418_v36 = vadd.f32 %v415_v32, %v2024_v35  ;;  %v2098_v32 = vld [vmem:[%s2328_s6] ss:$0 sm:$0xff] }
 0x99d   :  { %440 = vrot.lane.b32.xlu2 %v438_v33, %s1771_s26  ;;  %v1582_v37 = vmul.f32 -1.442695, %v418_v36 }
 0x99f   :  { %1655 = vpow2.f32 %v1582_v37 }
 0x9a2   :  { %v632_v33 = vpop.f32.mrf.mxu2 }
 0x9a3   :  { %v633_v34 = vadd.f32 %v2098_v32, %v632_v33 }
 0x9a5   :  { %v1656_v38 = vpop.eup %1655 }
 0x9a6   :  { %v422_v39 = vadd.f32 1.0, %v1656_v38 }
 0x9a8   :  { %1657 = vrcp.f32 %v422_v39  ;;  %v434_v44 = vand.u32 2147483648, %v422_v39  ;;  %vm428_vm3 = vweird.f32 %v422_v39  ;;  %v432_v45 = vand.u32 2147483647, %v422_v39 }
 0x9aa   :  { %v435_v25 = vor.u32 1.1754944e-38, %v434_v44  ;;  %vm433_vm6 = vcmp.eq.f32.partialorder %v432_v45, 8.507059e+37 }
 0x9ae   :  { %v1658_v40 = vpop.eup %1657 }
 0x9af   :  { %v424_v41 = vmul.f32 %v1658_v40, %v422_v39  ;;  %vm429_vm0 = vweird.f32 %v1658_v40 }
 0x9b0   :  { %vm430_vm4 = vmor %vm428_vm3, %vm429_vm0 }
 0x9b1   :  { %v425_v42 = vsub.f32 1.0, %v424_v41 }
 0x9b3   :  { %v426_v52 = vmul.f32 %v1658_v40, %v425_v42 }
 0x9b5   :  { %v427_v43 = vadd.f32 %v1658_v40, %v426_v52 }
 0x9b7   :  { %v431_v46 = vsel %vm430_vm4, %v1658_v40, %v427_v43 }
 0x9b8   :  { %v436_v48 = vsel %vm433_vm6, %v435_v25, %v431_v46 }
 0x9b9   :  { %v450_v54 = vsub.f32 1.0, %v436_v48  ;;  %v457_v57 = vmul.f32 %v436_v48, %v393_v24 }
 0x9f7   :  { %v441_v47 = vpop.permute.xlu2 %440 }
 0x9f8   :  { %v443_v49 = vmul.f32 %v441_v47, %v436_v48 }
 0x9fa   :  { %445 = vrot.lane.b32.xlu0 %v443_v49, %s1771_s26 }
 0xa02   :  { %677 = vrot.lane.b32.xlu0 %v1626_v0, %s1771_s26 }
 0xa6c   :  { %v446_v50 = vpop.permute.xlu0 %445 }
 0xa6d   :  { %v448_v51 = vadd.f32 %v446_v50, %v2024_v35 }
 0xa6f   :  { %1659 = vtanh.f32 %v448_v51 }
 0xa74   :  { %v2090_v7 = vpop.permute.xlu0 %677 }
 0xa75   :  { %v1660_v53 = vpop.eup %1659 }
 0xa76   :  { %452 = vrot.lane.b32.xlu1 %v1660_v53, %s1773_s1 }
 0xae8   :  { %v453_v56 = vpop.permute.xlu1 %452 }
 0xae9   :  { %v455_v58 = vmul.f32 %v453_v56, %v450_v54 }
 0xaeb   :  { %v2030_v59 = vadd.f32 %v457_v57, %v455_v58 }
 0xaed   :  { %460 = vrot.lane.b32.xlu2 %v2030_v59, %s1773_s1  ;;  %v526_v21 = vrot.slane %v2030_v59, 6 }
 0xb47   :  { %v461_v1 = vpop.permute.xlu2 %460 }
 0xb48   :  { %1583 = vmatmul.msk.f32.vlgmr.msrb.gmra.mxu3 %vm108_vm5, %v461_v1  ;;  %1598 = vmatmul.msk.f32.vlgmr.msrb.gmra.mxu0 %vm108_vm5, %v461_v1 }
 0xb49   :  { %797 = vmatpush.msrb.mxu3 %v1978_v26 }
 0xb4b   :  { %798 = vmatpush.msrb.mxu3 %v1983_v27 }
 0xb4d   :  { %799 = vmatpush.msrb.mxu3 %v1993_v29 }
 0xb4f   :  { %800 = vmatpush.msrb.mxu3 %v2001_v30 }
 0xb50   :  { %651 = vmatmul.f32.vlgmr.msra.gmra.mxu3 %v1772_v12 }
 0xb51   :  { %907 = vmatpush.msra.mxu3 %v2037_v60 }
 0xb53   :  { %908 = vmatpush.msra.mxu3 %v2042_v61 }
 0xb55   :  { %909 = vmatpush.msra.mxu3 %v2049_v62 }
 0xb57   :  { %910 = vmatpush.msra.mxu3 %v2056_v63 }
 0xb58   :  { %1592 = vmatmul.msk.f32.vlgmr.msrb.gmra.mxu3 %vm108_vm5, %v1961_v55 }
 0xb59   :  { %1077 = vmatpush.msrb.mxu3 %v2037_v60 }
 0xb5b   :  { %1078 = vmatpush.msrb.mxu3 %v2042_v61 }
 0xb5d   :  { %1079 = vmatpush.msrb.mxu3 %v2049_v62 }
 0xb5f   :  { %1080 = vmatpush.msrb.mxu3 %v2056_v63 }
 0xbcb   :  { %v481_v12 = vpop.f32.mrf.mxu3 }
 0xbcc   :  { %v485_v2 = vrot.slane %v481_v12, 6  ;;  %v507_v3 = vadd.f32 %v481_v12, %v1922_v22 }
 0xbce   :  { %v487_v4 = vadd.f32 %v485_v2, %v2024_v35  ;;  %v509_v5 = vrot.slane %v507_v3, 6 }
 0xbd0   :  { %v1584_v6 = vmul.f32 -1.442695, %v487_v4  ;;  %510 = vrot.lane.b32.xlu2 %v509_v5, %s1771_s26 }
 0xbd2   :  { %1661 = vpow2.f32 %v1584_v6 }
 0xbd3   :  { %v652_v55 = vpop.f32.mrf.mxu3 }
 0xbd4   :  { %v680_v8 = vadd.f32 %v2090_v7, %v652_v55  ;;  %v655_v36 = vadd.f32 %v652_v55, %v633_v34 }
 0xbd6   :  { %682 = vrot.lane.b32.xlu1 %v680_v8, %s1771_s26  ;;  %v1588_v37 = vmul.f32 -1.442695, %v655_v36 }
 0xbd8   :  { %v1662_v9 = vpop.eup %1661 }
 0xbd9   :  { %v491_v10 = vadd.f32 1.0, %v1662_v9 }
 0xbdb   :  { %1663 = vrcp.f32 %v491_v10  ;;  %v503_v15 = vand.u32 2147483648, %v491_v10  ;;  %v501_v17 = vand.u32 2147483647, %v491_v10  ;;  %vm497_vm8 = vweird.f32 %v491_v10 }
 0xbdc   :  { %1665 = vpow2.f32 %v1588_v37 }
 0xbdd   :  { %v504_v19 = vor.u32 1.1754944e-38, %v503_v15  ;;  %vm502_vm10 = vcmp.eq.f32.partialorder %v501_v17, 8.507059e+37 }
 0xbe1   :  { %v1664_v11 = vpop.eup %1663 }
 0xbe2   :  { %v493_v13 = vmul.f32 %v1664_v11, %v491_v10  ;;  %vm498_vm7 = vweird.f32 %v1664_v11  ;;  %v1666_v38 = vpop.eup %1665  ;;  %v2126_v10 = vld [vmem:[%s2331_s9 + $0x18] sm:$0xff] }
 0xbe3   :  { %vm499_vm9 = vmor %vm497_vm8, %vm498_vm7  ;;  %v659_v39 = vadd.f32 1.0, %v1666_v38  ;;  %1297 = vmatpush.msrb.mxu0 %v2126_v10 }
 0xbe4   :  { %v494_v14 = vsub.f32 1.0, %v493_v13  ;;  %v2146_v13 = vld [vmem:[%s2331_s9] sm:$0xff] }
 0xbe5   :  { %1667 = vrcp.f32 %v659_v39  ;;  %v671_v46 = vand.u32 2147483648, %v659_v39  ;;  %vm665_vm12 = vweird.f32 %v659_v39  ;;  %v669_v25 = vand.u32 2147483647, %v659_v39 }
 0xbe6   :  { %v495_v16 = vmul.f32 %v1664_v11, %v494_v14 }
 0xbe7   :  { %v672_v48 = vor.u32 1.1754944e-38, %v671_v46  ;;  %vm670_vm14 = vcmp.eq.f32.partialorder %v669_v25, 8.507059e+37 }
 0xbe8   :  { %v496_v18 = vadd.f32 %v1664_v11, %v495_v16 }
 0xbea   :  { %v500_v23 = vsel %vm499_vm9, %v1664_v11, %v496_v18  ;;  %v2133_v11 = vld [vmem:[%s2331_s9 + $0x10] sm:$0xff] }
 0xbeb   :  { %v505_v24 = vsel %vm502_vm10, %v504_v19, %v500_v23  ;;  %v1668_v42 = vpop.eup %1667  ;;  %1298 = vmatpush.msrb.mxu0 %v2133_v11 }
 0xbec   :  { %v528_v28 = vmul.f32 %v526_v21, %v505_v24  ;;  %v661_v52 = vmul.f32 %v1668_v42, %v659_v39  ;;  %vm666_vm11 = vweird.f32 %v1668_v42  ;;  %v520_v0 = vsub.f32 1.0, %v505_v24 }
 0xbed   :  { %vm667_vm13 = vmor %vm665_vm12, %vm666_vm11 }
 0xbee   :  { %v662_v43 = vsub.f32 1.0, %v661_v52 }
 0xbf0   :  { %v663_v44 = vmul.f32 %v1668_v42, %v662_v43 }
 0xbf2   :  { %v664_v45 = vadd.f32 %v1668_v42, %v663_v44 }
 0xbf4   :  { %v668_v47 = vsel %vm667_vm13, %v1668_v42, %v664_v45 }
 0xbf5   :  { %v673_v49 = vsel %vm670_vm14, %v672_v48, %v668_v47 }
 0xbf6   :  { %v692_v3 = vsub.f32 1.0, %v673_v49  ;;  %v698_v6 = vmul.f32 0.0, %v673_v49 }
 0xc2a   :  { %v511_v40 = vpop.permute.xlu2 %510 }
 0xc2b   :  { %v513_v41 = vmul.f32 %v511_v40, %v505_v24 }
 0xc2d   :  { %515 = vrot.lane.b32.xlu1 %v513_v41, %s1771_s26 }
 0xc48   :  { %v683_v50 = vpop.permute.xlu1 %682 }
 0xc49   :  { %v685_v51 = vmul.f32 %v683_v50, %v673_v49  ;;  %v802_v50 = vpop.f32.mrf.mxu3 }
 0xc4b   :  { %687 = vrot.lane.b32.xlu0 %v685_v51, %s1771_s26  ;;  %v803_v51 = vadd.f32 %v2098_v32, %v802_v50 }
 0xc9f   :  { %v516_v53 = vpop.permute.xlu1 %515 }
 0xca0   :  { %v518_v54 = vadd.f32 %v516_v53, %v2024_v35 }
 0xca2   :  { %1669 = vtanh.f32 %v518_v54 }
 0xca8   :  { %v1670_v56 = vpop.eup %1669 }
 0xca9   :  { %522 = vrot.lane.b32.xlu0 %v1670_v56, %s1773_s1 }
 0xcbd   :  { %v688_v57 = vpop.permute.xlu0 %687 }
 0xcbe   :  { %v690_v58 = vadd.f32 %v688_v57, %v633_v34 }
 0xcc0   :  { %1671 = vtanh.f32 %v690_v58 }
 0xcc6   :  { %v1672_v59 = vpop.eup %1671 }
 0xcc7   :  { %694 = vrot.lane.b32.xlu2 %v1672_v59, %s1773_s1 }
 0xd1b   :  { %v523_v1 = vpop.permute.xlu0 %522 }
 0xd1c   :  { %v525_v12 = vmul.f32 %v523_v1, %v520_v0 }
 0xd1e   :  { %v2106_v2 = vadd.f32 %v528_v28, %v525_v12 }
 0xd20   :  { %v531_v4 = vrot.slane %v2106_v2, 2 }
 0xd21   :  { %v695_v5 = vpop.permute.xlu2 %694 }
 0xd22   :  { %v697_v55 = vmul.f32 %v695_v5, %v692_v3  ;;  %532 = vrot.lane.b32.xlu2 %v531_v4, %s1773_s1 }
 0xd24   :  { %v2110_v8 = vadd.f32 %v698_v6, %v697_v55 }
 0xd26   :  { %721 = vrot.lane.b32.xlu1 %v2110_v8, %s1773_s1 }
 0xd7c   :  { %v533_v9 = vpop.permute.xlu2 %532 }
 0xd7d   :  { %1585 = vmatmul.msk.f32.vlgmr.msra.gmra.mxu1 %vm108_vm5, %v533_v9 }
 0xd7e   :  { %822 = vmatpush.msra.mxu1 %v2037_v60 }
 0xd80   :  { %823 = vmatpush.msra.mxu1 %v2042_v61 }
 0xd82   :  { %824 = vmatpush.msra.mxu1 %v2049_v62 }
 0xd84   :  { %825 = vmatpush.msra.mxu1 %v2056_v63 }
 0xd85   :  { %1589 = vmatmul.msk.f32.vlgmr.msrb.gmra.mxu1 %vm108_vm5, %v1950_v20  ;;  %v2140_v20 = vld [vmem:[%s2331_s9 + $0x8] sm:$0xff] }
 0xd86   :  { %992 = vmatpush.msrb.mxu1 %v2037_v60  ;;  %1299 = vmatpush.msrb.mxu0 %v2140_v20 }
 0xd88   :  { %993 = vmatpush.msrb.mxu1 %v2042_v61  ;;  %1300 = vmatpush.msrb.mxu0 %v2146_v13 }
 0xd8a   :  { %994 = vmatpush.msrb.mxu1 %v2049_v62 }
 0xd8c   :  { %995 = vmatpush.msrb.mxu1 %v2056_v63 }
 0xd98   :  { %v722_v14 = vpop.permute.xlu1 %721 }
 0xd99   :  { %1590 = vmatmul.msk.f32.vlgmr.msrb.gmra.mxu2 %vm108_vm5, %v722_v14 }
 0xd9a   :  { %1052 = vmatpush.msrb.mxu2 %v1978_v26 }
 0xd9c   :  { %1053 = vmatpush.msrb.mxu2 %v1983_v27 }
 0xd9e   :  { %1054 = vmatpush.msrb.mxu2 %v1993_v29 }
 0xda0   :  { %1055 = vmatpush.msrb.mxu2 %v2001_v30 }
 0xda1   :  { %1595 = vmatmul.msk.f32.vlgmr.msra.gmra.mxu2 %vm108_vm5, %v2015_v31 }
 0xda2   :  { %1238 = vmatpush.msra.mxu2 %v2126_v10 }
 0xda4   :  { %1239 = vmatpush.msra.mxu2 %v2133_v11 }
 0xda6   :  { %1240 = vmatpush.msra.mxu2 %v2140_v20 }
 0xda8   :  { %1241 = vmatpush.msra.mxu2 %v2146_v13 }
 0xda9   :  { %1601 = vmatmul.msk.f32.vlgmr.msrb.gmra.mxu2 %vm108_vm5, %v533_v9 }
 0xdaa   :  { %1349 = vmatpush.msrb.mxu2 %v2126_v10 }
 0xdac   :  { %1350 = vmatpush.msrb.mxu2 %v2133_v11 }
 0xdae   :  { %1351 = vmatpush.msrb.mxu2 %v2140_v20 }
 0xdb0   :  { %1352 = vmatpush.msrb.mxu2 %v2146_v13 }
 0xdb1   :  { %1607 = vmatmul.msk.f32.vlgmr.msra.gmra.mxu2 %vm108_vm5, %v722_v14 }
 0xdfa   :  { %v2168_v29 = vpop.f32.mrf.mxu1 }
 0xe02   :  { %v717_v30 = vpop.f32.mrf.mxu1 }
 0xe03   :  { %v718_v31 = vadd.f32 %v2098_v32, %v717_v30 }
 0xe1c   :  { %v742_v26 = vpop.f32.mrf.mxu2 }
 0xe1d   :  { %v765_v27 = vadd.f32 %v742_v26, %v2090_v7  ;;  %v745_v15 = vadd.f32 %v742_v26, %v718_v31 }
 0xe1f   :  { %767 = vrot.lane.b32.xlu0 %v765_v27, %s1771_s26  ;;  %v1591_v16 = vmul.f32 -1.442695, %v745_v15 }
 0xe21   :  { %1673 = vpow2.f32 %v1591_v16 }
 0xe27   :  { %v1674_v17 = vpop.eup %1673 }
 0xe28   :  { %v749_v18 = vadd.f32 1.0, %v1674_v17 }
 0xe2a   :  { %1675 = vrcp.f32 %v749_v18  ;;  %v761_v33 = vand.u32 2147483648, %v749_v18  ;;  %vm755_vm1 = vweird.f32 %v749_v18  ;;  %v759_v34 = vand.u32 2147483647, %v749_v18 }
 0xe2c   :  { %v762_v37 = vor.u32 1.1754944e-38, %v761_v33  ;;  %vm760_vm0 = vcmp.eq.f32.partialorder %v759_v34, 8.507059e+37 }
 0xe30   :  { %v1676_v19 = vpop.eup %1675 }
 0xe31   :  { %v751_v21 = vmul.f32 %v1676_v19, %v749_v18  ;;  %vm756_vm15 = vweird.f32 %v1676_v19  ;;  %v887_v18 = vpop.f32.mrf.mxu2 }
 0xe32   :  { %vm757_vm2 = vmor %vm755_vm1, %vm756_vm15 }
 0xe33   :  { %v752_v23 = vsub.f32 1.0, %v751_v21 }
 0xe35   :  { %v753_v24 = vmul.f32 %v1676_v19, %v752_v23 }
 0xe37   :  { %v754_v28 = vadd.f32 %v1676_v19, %v753_v24 }
 0xe39   :  { %v758_v36 = vsel %vm757_vm2, %v1676_v19, %v754_v28  ;;  %v888_v19 = vadd.f32 %v2098_v32, %v887_v18 }
 0xe3a   :  { %v763_v39 = vsel %vm760_vm0, %v762_v37, %v758_v36 }
 0xe3b   :  { %v777_v43 = vsub.f32 1.0, %v763_v39  ;;  %v783_v45 = vmul.f32 %v763_v39, %v2110_v8 }
 0xe91   :  { %v768_v38 = vpop.permute.xlu0 %767 }
 0xe92   :  { %v770_v40 = vmul.f32 %v768_v38, %v763_v39 }
 0xe94   :  { %772 = vrot.lane.b32.xlu1 %v770_v40, %s1771_s26 }
 0xf06   :  { %v773_v41 = vpop.permute.xlu1 %772 }
 0xf07   :  { %v775_v42 = vadd.f32 %v773_v41, %v718_v31 }
 0xf09   :  { %1677 = vtanh.f32 %v775_v42 }
 0xf0f   :  { %v1678_v52 = vpop.eup %1677 }
 0xf10   :  { %779 = vrot.lane.b32.xlu2 %v1678_v52, %s1773_s1 }
 0xf6a   :  { %v780_v44 = vpop.permute.xlu2 %779 }
 0xf6b   :  { %v782_v46 = vmul.f32 %v780_v44, %v777_v43 }
 0xf6d   :  { %v2174_v25 = vadd.f32 %v783_v45, %v782_v46 }
 0xf6f   :  { %806 = vrot.lane.b32.xlu0 %v2174_v25, %s1773_s1 }
 0xfe1   :  { %v2178_v47 = vpop.permute.xlu0 %806 }
 0xfe2   :  { %1593 = vmatmul.msk.f32.vlgmr.msra.gmra.mxu1 %vm108_vm5, %v2178_v47 }
 0xfe3   :  { %1168 = vmatpush.msra.mxu1 %v2037_v60 }
 0xfe5   :  { %1169 = vmatpush.msra.mxu1 %v2042_v61 }
 0xfe7   :  { %1170 = vmatpush.msra.mxu1 %v2049_v62 }
 0xfe9   :  { %1171 = vmatpush.msra.mxu1 %v2056_v63 }
0x105f   :  { %v827_v48 = vpop.f32.mrf.mxu1 }
0x1060   :  { %v850_v49 = vadd.f32 %v827_v48, %v2090_v7  ;;  %v830_v53 = vadd.f32 %v827_v48, %v803_v51 }
0x1062   :  { %852 = vrot.lane.b32.xlu1 %v850_v49, %s1771_s26  ;;  %v1594_v54 = vmul.f32 -1.442695, %v830_v53 }
0x1064   :  { %1679 = vpow2.f32 %v1594_v54 }
0x106a   :  { %v1680_v56 = vpop.eup %1679 }
0x106b   :  { %v834_v57 = vadd.f32 1.0, %v1680_v56 }
0x106d   :  { %1681 = vrcp.f32 %v834_v57  ;;  %v846_v63 = vand.u32 2147483648, %v834_v57  ;;  %vm840_vm4 = vweird.f32 %v834_v57  ;;  %v844_v0 = vand.u32 2147483647, %v834_v57 }
0x106f   :  { %v847_v12 = vor.u32 1.1754944e-38, %v846_v63  ;;  %vm845_vm7 = vcmp.eq.f32.partialorder %v844_v0, 8.507059e+37 }
0x1073   :  { %v1682_v60 = vpop.eup %1681 }
0x1074   :  { %v836_v61 = vmul.f32 %v1682_v60, %v834_v57  ;;  %vm841_vm3 = vweird.f32 %v1682_v60 }
0x1075   :  { %vm842_vm6 = vmor %vm840_vm4, %vm841_vm3 }
0x1076   :  { %v837_v58 = vsub.f32 1.0, %v836_v61  ;;  %v972_v61 = vpop.f32.mrf.mxu0 }
0x1078   :  { %v838_v62 = vmul.f32 %v1682_v60, %v837_v58  ;;  %v973_v58 = vadd.f32 %v2098_v32, %v972_v61 }
0x107a   :  { %v839_v59 = vadd.f32 %v1682_v60, %v838_v62 }
0x107c   :  { %v843_v1 = vsel %vm842_vm6, %v1682_v60, %v839_v59 }
0x107d   :  { %v848_v4 = vsel %vm845_vm7, %v847_v12, %v843_v1 }
0x107e   :  { %v862_v14 = vsub.f32 1.0, %v848_v4  ;;  %v868_v27 = vmul.f32 %v848_v4, %v2174_v25 }
0x10d4   :  { %v853_v3 = vpop.permute.xlu1 %852 }
0x10d5   :  { %v855_v5 = vmul.f32 %v853_v3, %v848_v4 }
0x10d7   :  { %857 = vrot.lane.b32.xlu2 %v855_v5, %s1771_s26 }
0x1131   :  { %v858_v6 = vpop.permute.xlu2 %857 }
0x1132   :  { %v860_v55 = vadd.f32 %v858_v6, %v803_v51 }
0x1134   :  { %1683 = vtanh.f32 %v860_v55 }
0x113a   :  { %v1684_v9 = vpop.eup %1683 }
0x113b   :  { %864 = vrot.lane.b32.xlu0 %v1684_v9, %s1773_s1 }
0x11ad   :  { %v865_v26 = vpop.permute.xlu0 %864 }
0x11ae   :  { %v867_v30 = vmul.f32 %v865_v26, %v862_v14 }
0x11b0   :  { %v2192_v31 = vadd.f32 %v868_v27, %v867_v30 }
0x11b2   :  { %891 = vrot.lane.b32.xlu1 %v2192_v31, %s1773_s1 }
0x1224   :  { %v2196_v15 = vpop.permute.xlu1 %891 }
0x1225   :  { %1596 = vmatmul.msk.f32.vlgmr.msra.gmra.mxu3 %vm108_vm5, %v2196_v15 }
0x1226   :  { %1271 = vmatpush.msra.mxu3 %v2126_v10 }
0x1228   :  { %1272 = vmatpush.msra.mxu3 %v2133_v11 }
0x122a   :  { %1273 = vmatpush.msra.mxu3 %v2140_v20 }
0x122c   :  { %1274 = vmatpush.msra.mxu3 %v2146_v13 }
0x12a8   :  { %v912_v16 = vpop.f32.mrf.mxu3 }
0x12a9   :  { %v935_v17 = vadd.f32 %v912_v16, %v2090_v7  ;;  %v915_v21 = vadd.f32 %v912_v16, %v888_v19 }
0x12ab   :  { %937 = vrot.lane.b32.xlu2 %v935_v17, %s1771_s26  ;;  %v1597_v23 = vmul.f32 -1.442695, %v915_v21 }
0x12ad   :  { %1685 = vpow2.f32 %v1597_v23 }
0x12b3   :  { %v1686_v24 = vpop.eup %1685 }
0x12b4   :  { %v919_v28 = vadd.f32 1.0, %v1686_v24 }
0x12b6   :  { %1687 = vrcp.f32 %v919_v28  ;;  %v931_v39 = vand.u32 2147483648, %v919_v28  ;;  %vm925_vm9 = vweird.f32 %v919_v28  ;;  %v929_v40 = vand.u32 2147483647, %v919_v28 }
0x12b8   :  { %v932_v42 = vor.u32 1.1754944e-38, %v931_v39  ;;  %vm930_vm11 = vcmp.eq.f32.partialorder %v929_v40, 8.507059e+37 }
0x12bc   :  { %v1688_v33 = vpop.eup %1687 }
0x12bd   :  { %v921_v34 = vmul.f32 %v1688_v33, %v919_v28  ;;  %vm926_vm8 = vweird.f32 %v1688_v33 }
0x12be   :  { %vm927_vm10 = vmor %vm925_vm9, %vm926_vm8 }
0x12bf   :  { %v922_v36 = vsub.f32 1.0, %v921_v34 }
0x12c1   :  { %v923_v37 = vmul.f32 %v1688_v33, %v922_v36 }
0x12c3   :  { %v924_v38 = vadd.f32 %v1688_v33, %v923_v37 }
0x12c5   :  { %v928_v41 = vsel %vm927_vm10, %v1688_v33, %v924_v38 }
0x12c6   :  { %v933_v43 = vsel %vm930_vm11, %v932_v42, %v928_v41 }
0x12c7   :  { %v947_v49 = vsub.f32 1.0, %v933_v43  ;;  %v953_v51 = vmul.f32 %v933_v43, %v2192_v31 }
0x1305   :  { %v938_v52 = vpop.permute.xlu2 %937 }
0x1306   :  { %v940_v44 = vmul.f32 %v938_v52, %v933_v43 }
0x1308   :  { %942 = vrot.lane.b32.xlu0 %v940_v44, %s1771_s26 }
0x137a   :  { %v943_v45 = vpop.permute.xlu0 %942 }
0x137b   :  { %v945_v46 = vadd.f32 %v943_v45, %v888_v19  ;;  %v579_v19 = vadd.f32 %v2168_v29, %v1922_v22  ;;  %v557_v22 = vrot.slane %v2168_v29, 4 }
0x137d   :  { %1689 = vtanh.f32 %v945_v46  ;;  %v581_v21 = vrot.slane %v579_v19, 4  ;;  %v559_v37 = vadd.f32 %v557_v22, %v2024_v35 }
0x137f   :  { %v1586_v38 = vmul.f32 -1.442695, %v559_v37 }
0x1383   :  { %v1690_v48 = vpop.eup %1689 }
0x1384   :  { %949 = vrot.lane.b32.xlu1 %v1690_v48, %s1773_s1 }
0x13f6   :  { %v950_v50 = vpop.permute.xlu1 %949 }
0x13f7   :  { %v952_v53 = vmul.f32 %v950_v50, %v947_v49 }
0x13f9   :  { %v2210_v54 = vadd.f32 %v953_v51, %v952_v53 }
0x13fb   :  { %976 = vrot.lane.b32.xlu2 %v2210_v54, %s1773_s1 }
0x1455   :  { %v2214_v56 = vpop.permute.xlu2 %976 }
0x1456   :  { %1599 = vmatmul.msk.f32.vlgmr.msrb.gmra.mxu1 %vm108_vm5, %v2214_v56 }
0x1457   :  { %1323 = vmatpush.msrb.mxu1 %v2126_v10 }
0x1459   :  { %1324 = vmatpush.msrb.mxu1 %v2133_v11 }
0x145b   :  { %1325 = vmatpush.msrb.mxu1 %v2140_v20 }
0x145d   :  { %1326 = vmatpush.msrb.mxu1 %v2146_v13 }
0x14d3   :  { %v997_v57 = vpop.f32.mrf.mxu1 }
0x14d4   :  { %v1020_v60 = vadd.f32 %v997_v57, %v2090_v7  ;;  %v1000_v62 = vadd.f32 %v997_v57, %v973_v58  ;;  %v1057_v57 = vpop.f32.mrf.mxu2 }
0x14d6   :  { %1022 = vrot.lane.b32.xlu0 %v1020_v60, %s1771_s26  ;;  %v1600_v59 = vmul.f32 -1.442695, %v1000_v62  ;;  %v1058_v60 = vadd.f32 %v2098_v32, %v1057_v57 }
0x14d8   :  { %1691 = vpow2.f32 %v1600_v59 }
0x14dc   :  { %v1243_v57 = vpop.f32.mrf.mxu2 }
0x14de   :  { %v1692_v63 = vpop.eup %1691 }
0x14df   :  { %v1004_v0 = vadd.f32 1.0, %v1692_v63 }
0x14e1   :  { %1693 = vrcp.f32 %v1004_v0  ;;  %v1016_v6 = vand.u32 2147483648, %v1004_v0  ;;  %vm1010_vm13 = vweird.f32 %v1004_v0  ;;  %v1014_v55 = vand.u32 2147483647, %v1004_v0 }
0x14e3   :  { %v1017_v14 = vor.u32 1.1754944e-38, %v1016_v6  ;;  %vm1015_vm15 = vcmp.eq.f32.partialorder %v1014_v55, 8.507059e+37 }
0x14e7   :  { %v1694_v1 = vpop.eup %1693 }
0x14e8   :  { %v1006_v12 = vmul.f32 %v1694_v1, %v1004_v0  ;;  %vm1011_vm12 = vweird.f32 %v1694_v1 }
0x14e9   :  { %vm1012_vm14 = vmor %vm1010_vm13, %vm1011_vm12  ;;  %vm1251_vm13 = vcmask 254976  }
0x14ea   :  { %v1007_v3 = vsub.f32 1.0, %v1006_v12 }
0x14ec   :  { %v1008_v4 = vmul.f32 %v1694_v1, %v1007_v3 }
0x14ee   :  { %v1009_v5 = vadd.f32 %v1694_v1, %v1008_v4 }
0x14f0   :  { %v1013_v9 = vsel %vm1012_vm14, %v1694_v1, %v1009_v5 }
0x14f1   :  { %v1018_v27 = vsel %vm1015_vm15, %v1017_v14, %v1013_v9 }
0x14f2   :  { %v1032_v23 = vsub.f32 1.0, %v1018_v27  ;;  %v1038_v28 = vmul.f32 %v1018_v27, %v2210_v54 }
0x1548   :  { %v1023_v26 = vpop.permute.xlu0 %1022 }
0x1549   :  { %v1025_v30 = vmul.f32 %v1023_v26, %v1018_v27 }
0x154b   :  { %1027 = vrot.lane.b32.xlu1 %v1025_v30, %s1771_s26 }
0x15bd   :  { %v1028_v16 = vpop.permute.xlu1 %1027 }
0x15be   :  { %v1030_v17 = vadd.f32 %v1028_v16, %v973_v58 }
0x15c0   :  { %1695 = vtanh.f32 %v1030_v17 }
0x15c1   :  { %1697 = vpow2.f32 %v1586_v38 }
0x15c6   :  { %v1696_v18 = vpop.eup %1695 }
0x15c7   :  { %1034 = vrot.lane.b32.xlu2 %v1696_v18, %s1773_s1  ;;  %v1698_v39 = vpop.eup %1697 }
0x15c8   :  { %v563_v40 = vadd.f32 1.0, %v1698_v39 }
0x15ca   :  { %1699 = vrcp.f32 %v563_v40  ;;  %v575_v48 = vand.u32 2147483648, %v563_v40  ;;  %vm569_vm2 = vweird.f32 %v563_v40 }
0x15cc   :  { %v576_v49 = vor.u32 1.1754944e-38, %v575_v48 }
0x15cf   :  { %582 = vrot.lane.b32.xlu2 %v581_v21, %s1771_s26  ;;  %v598_v21 = vrot.slane %v2106_v2, 6 }
0x15d0   :  { %v1700_v41 = vpop.eup %1699 }
0x15d1   :  { %v565_v42 = vmul.f32 %v1700_v41, %v563_v40  ;;  %vm570_vm1 = vweird.f32 %v1700_v41 }
0x15d2   :  { %vm571_vm0 = vmor %vm569_vm2, %vm570_vm1 }
0x15d3   :  { %v566_v52 = vsub.f32 1.0, %v565_v42 }
0x15d5   :  { %v567_v43 = vmul.f32 %v1700_v41, %v566_v52 }
0x15d7   :  { %v568_v45 = vadd.f32 %v1700_v41, %v567_v43 }
0x15d9   :  { %v572_v29 = vsel %vm571_vm0, %v1700_v41, %v568_v45  ;;  %vm1554_vm0 = vcmask 25600  }
0x1621   :  { %v1035_v24 = vpop.permute.xlu2 %1034 }
0x1622   :  { %v1037_v33 = vmul.f32 %v1035_v24, %v1032_v23 }
0x1624   :  { %v2231_v34 = vadd.f32 %v1038_v28, %v1037_v33 }
0x1626   :  { %1061 = vrot.lane.b32.xlu0 %v2231_v34, %s1773_s1 }
0x1629   :  { %v583_v50 = vpop.permute.xlu2 %582 }
0x1698   :  { %v1062_v36 = vpop.permute.xlu0 %1061 }
0x1699   :  { %1602 = vmatmul.msk.f32.vlgmr.msrb.gmra.mxu3 %vm108_vm5, %v1062_v36  ;;  %1611 = vmatmul.msk.f32.vlgmr.msrb.gmra.mxu2 %vm108_vm5, %v1062_v36 }
0x169a   :  { %1375 = vmatpush.msrb.mxu3 %v2126_v10 }
0x169c   :  { %1376 = vmatpush.msrb.mxu3 %v2133_v11 }
0x169e   :  { %1377 = vmatpush.msrb.mxu3 %v2140_v20 }
0x16a0   :  { %1378 = vmatpush.msrb.mxu3 %v2146_v13 }
0x16a1   :  { %1608 = vmatmul.msk.f32.vlgmr.msra.gmra.mxu3 %vm108_vm5, %v2178_v47  ;;  %v573_v47 = vand.u32 2147483647, %v563_v40 }
0x16a3   :  { %vm574_vm3 = vcmp.eq.f32.partialorder %v573_v47, 8.507059e+37 }
0x16a4   :  { %v577_v51 = vsel %vm574_vm3, %v576_v49, %v572_v29 }
0x16a5   :  { %v585_v53 = vmul.f32 %v583_v50, %v577_v51  ;;  %v592_v23 = vsub.f32 1.0, %v577_v51  ;;  %v600_v28 = vmul.f32 %v598_v21, %v577_v51 }
0x171c   :  { %v1082_v44 = vpop.f32.mrf.mxu3 }
0x171d   :  { %v1105_v46 = vadd.f32 %v1082_v44, %v2090_v7  ;;  %v1085_v61 = vadd.f32 %v1082_v44, %v1058_v60 }
0x171f   :  { %1107 = vrot.lane.b32.xlu1 %v1105_v46, %s1771_s26  ;;  %v1603_v58 = vmul.f32 -1.442695, %v1085_v61  ;;  %v1354_v61 = vpop.f32.mrf.mxu2 }
0x1721   :  { %1701 = vpow2.f32 %v1603_v58 }
0x1727   :  { %587 = vrot.lane.b32.xlu1 %v585_v53, %s1771_s26  ;;  %v1702_v62 = vpop.eup %1701  ;;  %v1627_v53 = vld [vmem:[%s2332_s10] ss:$0 sm:$0xff] }
0x1728   :  { %v1089_v59 = vadd.f32 1.0, %v1702_v62  ;;  %v1355_v58 = vadd.f32 %v1627_v53, %v1354_v61  ;;  %v1628_v62 = vld [vmem:[%s2333_s11] ss:$0 sm:$0xff] }
0x172a   :  { %1703 = vrcp.f32 %v1089_v59  ;;  %v1101_v4 = vand.u32 2147483648, %v1089_v59  ;;  %vm1095_vm6 = vweird.f32 %v1089_v59  ;;  %v1099_v5 = vand.u32 2147483647, %v1089_v59 }
0x172c   :  { %v1102_v55 = vor.u32 1.1754944e-38, %v1101_v4  ;;  %vm1100_vm8 = vcmp.eq.f32.partialorder %v1099_v5, 8.507059e+37 }
0x1730   :  { %v1704_v63 = vpop.eup %1703 }
0x1731   :  { %v1091_v0 = vmul.f32 %v1704_v63, %v1089_v59  ;;  %vm1096_vm4 = vweird.f32 %v1704_v63 }
0x1732   :  { %vm1097_vm7 = vmor %vm1095_vm6, %vm1096_vm4 }
0x1733   :  { %v1092_v1 = vsub.f32 1.0, %v1091_v0 }
0x1735   :  { %v1093_v12 = vmul.f32 %v1704_v63, %v1092_v1 }
0x1737   :  { %v1094_v3 = vadd.f32 %v1704_v63, %v1093_v12 }
0x1739   :  { %v1098_v6 = vsel %vm1097_vm7, %v1704_v63, %v1094_v3 }
0x173a   :  { %v1103_v14 = vsel %vm1100_vm8, %v1102_v55, %v1098_v6  ;;  %v1276_v55 = vpop.f32.mrf.mxu3 }
0x173b   :  { %v1123_v38 = vmul.f32 %v1103_v14, %v2231_v34 }
0x1791   :  { %v1108_v9 = vpop.permute.xlu1 %1107 }
0x1792   :  { %v1110_v26 = vmul.f32 %v1108_v9, %v1103_v14  ;;  %v1277_v9 = vadd.f32 %v1627_v53, %v1276_v55 }
0x1794   :  { %1112 = vrot.lane.b32.xlu0 %v1110_v26, %s1771_s26 }
0x1799   :  { %v588_v27 = vpop.permute.xlu1 %587 }
0x179a   :  { %v590_v30 = vadd.f32 %v588_v27, %v2024_v35  ;;  %v1117_v35 = vsub.f32 1.0, %v1103_v14 }
0x179c   :  { %1705 = vtanh.f32 %v590_v30 }
0x17a2   :  { %v1706_v16 = vpop.eup %1705 }
0x17a3   :  { %594 = vrot.lane.b32.xlu0 %v1706_v16, %s1773_s1 }
0x1806   :  { %v1113_v17 = vpop.permute.xlu0 %1112 }
0x1807   :  { %v1115_v18 = vadd.f32 %v1113_v17, %v1058_v60  ;;  %v1244_v60 = vadd.f32 %v1627_v53, %v1243_v57 }
0x1809   :  { %1707 = vtanh.f32 %v1115_v18 }
0x180f   :  { %v1708_v19 = vpop.eup %1707 }
0x1810   :  { %1119 = vrot.lane.b32.xlu2 %v1708_v19, %s1773_s1 }
0x1815   :  { %v595_v24 = vpop.permute.xlu0 %594 }
0x1816   :  { %v597_v33 = vmul.f32 %v595_v24, %v592_v23 }
0x1818   :  { %v601_v36 = vadd.f32 %v600_v28, %v597_v33 }
0x181a   :  { %v1126_v22 = vrot.slane %v601_v36, 4 }
0x181c   :  { %1127 = vrot.lane.b32.xlu2 %v1126_v22, %s1773_s1 }
0x186a   :  { %v1120_v37 = vpop.permute.xlu2 %1119 }
0x186b   :  { %v1122_v39 = vmul.f32 %v1120_v37, %v1117_v35 }
0x186d   :  { %v2256_v40 = vadd.f32 %v1123_v38, %v1122_v39 }
0x186f   :  { %1152 = vrot.lane.b32.xlu1 %v2256_v40, %s1773_s1 }
0x1876   :  { %v1128_v41 = vpop.permute.xlu2 %1127 }
0x1877   :  { %1604 = vmatmul.msk.f32.vlgmr.msra.gmra.mxu0 %vm108_vm5, %v1128_v41 }
0x1878   :  { %1406 = vmatpush.msra.mxu0 %v2126_v10 }
0x187a   :  { %1407 = vmatpush.msra.mxu0 %v2133_v11 }
0x187c   :  { %1408 = vmatpush.msra.mxu0 %v2140_v20 }
0x187e   :  { %1409 = vmatpush.msra.mxu0 %v2146_v13 }
0x187f   :  { %1609 = vmatmul.msk.f32.vlgmr.msrb.gmra.mxu0 %vm108_vm5, %v2196_v15 }
0x18e1   :  { %v1153_v2 = vpop.permute.xlu1 %1152 }
0x18e2   :  { %1605 = vmatmul.msk.f32.vlgmr.msra.gmra.mxu1 %vm108_vm5, %v1153_v2  ;;  %1612 = vmatmul.msk.f32.vlgmr.msrb.gmra.mxu3 %vm108_vm5, %v1153_v2 }
0x18ea   :  { %1610 = vmatmul.msk.f32.vlgmr.msrb.gmra.mxu1 %vm108_vm5, %v2214_v56 }
0x18f4   :  { %v1148_v11 = vpop.f32.mrf.mxu0 }
0x18f5   :  { %v1149_v20 = vadd.f32 %v2098_v32, %v1148_v11 }
0x18fc   :  { %v1302_v39 = vpop.f32.mrf.mxu0 }
0x18fd   :  { %v1303_v41 = vadd.f32 %v1627_v53, %v1302_v39 }
0x195f   :  { %v1173_v42 = vpop.f32.mrf.mxu1 }
0x1960   :  { %v1196_v10 = vadd.f32 %v1173_v42, %v2090_v7  ;;  %v1176_v13 = vadd.f32 %v1173_v42, %v1149_v20 }
0x1962   :  { %1198 = vrot.lane.b32.xlu0 %v1196_v10, %s1771_s26  ;;  %v1606_v52 = vmul.f32 -1.442695, %v1176_v13 }
0x1964   :  { %1709 = vpow2.f32 %v1606_v52 }
0x1965   :  { %v1380_v30 = vpop.f32.mrf.mxu3 }
0x1966   :  { %v1381_v17 = vadd.f32 %v1627_v53, %v1380_v30 }
0x1967   :  { %v1328_v14 = vpop.f32.mrf.mxu1 }
0x1968   :  { %v1329_v26 = vadd.f32 %v1627_v53, %v1328_v14 }
0x196a   :  { %v1710_v15 = vpop.eup %1709 }
0x196b   :  { %v1180_v43 = vadd.f32 1.0, %v1710_v15 }
0x196d   :  { %1711 = vrcp.f32 %v1180_v43  ;;  %v1192_v56 = vand.u32 2147483648, %v1180_v43  ;;  %vm1186_vm10 = vweird.f32 %v1180_v43  ;;  %v1190_v7 = vand.u32 2147483647, %v1180_v43 }
0x196e   :  { %1713 = vtanh.f32 %v1244_v60 }
0x196f   :  { %v1193_v49 = vor.u32 1.1754944e-38, %v1192_v56  ;;  %vm1191_vm12 = vcmp.eq.f32.partialorder %v1190_v7, 8.507059e+37  ;;  %1715 = vtanh.f32 %v1355_v58 }
0x1973   :  { %v1712_v44 = vpop.eup %1711 }
0x1974   :  { %v1182_v45 = vmul.f32 %v1712_v44, %v1180_v43  ;;  %vm1187_vm9 = vweird.f32 %v1712_v44  ;;  %v1714_v59 = vpop.eup %1713 }
0x1975   :  { %vm1188_vm11 = vmor %vm1186_vm10, %vm1187_vm9  ;;  %v1250_v63 = vmul.f32 %v1714_v59, %v1628_v62  ;;  %v1716_v1 = vpop.eup %1715 }
0x1976   :  { %v1183_v46 = vsub.f32 1.0, %v1182_v45  ;;  %v1358_v12 = vmul.f32 %v1716_v1, %v1628_v62  ;;  %v1774_v45 = vmov 0  }
0x1977   :  { %v1252_v0 = vsel %vm1251_vm13, %v1250_v63, 0.0  ;;  %1622 = vset.pattern.permute.xlu1 %v1774_v45  ;;  %1621 = vset.pattern.permute.xlu0 %v1774_v45 }
0x1978   :  { %v1184_v48 = vmul.f32 %v1712_v44, %v1183_v46  ;;  %v1359_v3 = vsel %vm1251_vm13, %v1358_v12, 0.0  ;;  %1620 = vset.pattern.permute.xlu2 %v1774_v45  ;;  %v1629_v46 = vld [vmem:[#allocation2] ss:$0 sm:$0xff] }
0x197a   :  { %v1185_v47 = vadd.f32 %v1712_v44, %v1184_v48 }
0x197c   :  { %v1189_v29 = vsel %vm1188_vm11, %v1712_v44, %v1185_v47 }
0x197d   :  { %v1194_v50 = vsel %vm1191_vm12, %v1193_v49, %v1189_v29 }
0x197e   :  { %v1208_v36 = vsub.f32 1.0, %v1194_v50  ;;  %v1214_v35 = vmul.f32 %v1194_v50, %v2256_v40 }
0x19d4   :  { %v1199_v32 = vpop.permute.xlu0 %1198 }
0x19d5   :  { %v1201_v51 = vmul.f32 %v1199_v32, %v1194_v50 }
0x19d7   :  { %1203 = vrot.lane.b32.xlu1 %v1201_v51, %s1771_s26 }
0x1a01   :  { %1253 = vadd.xlane.f32.xlu1 %v1252_v0 }
0x1a09   :  { %1360 = vadd.xlane.f32.xlu1 %v1359_v3 }
0x1a49   :  { %v1204_v4 = vpop.permute.xlu1 %1203 }
0x1a4a   :  { %v1206_v5 = vadd.f32 %v1204_v4, %v1149_v20 }
0x1a4c   :  { %1717 = vtanh.f32 %v1206_v5 }
0x1a4d   :  { %1719 = vtanh.f32 %v1277_v9 }
0x1a4e   :  { %1721 = vtanh.f32 %v1329_v26 }
0x1a4f   :  { %1723 = vtanh.f32 %v1381_v17 }
0x1a50   :  { %1725 = vtanh.f32 %v1303_v41 }
0x1a52   :  { %v1718_v6 = vpop.eup %1717 }
0x1a53   :  { %1210 = vrot.lane.b32.xlu2 %v1718_v6, %s1773_s1  ;;  %v1720_v27 = vpop.eup %1719 }
0x1a54   :  { %v1280_v16 = vmul.f32 %v1720_v27, %v1628_v62  ;;  %v1722_v19 = vpop.eup %1721 }
0x1a55   :  { %v1332_v21 = vmul.f32 %v1722_v19, %v1628_v62  ;;  %v1724_v24 = vpop.eup %1723 }
0x1a56   :  { %v1281_v18 = vsel %vm1251_vm13, %v1280_v16, 0.0  ;;  %v1384_v28 = vmul.f32 %v1724_v24, %v1628_v62  ;;  %v1726_v2 = vpop.eup %1725 }
0x1a57   :  { %v1333_v23 = vsel %vm1251_vm13, %v1332_v21, 0.0  ;;  %v1306_v42 = vmul.f32 %v1726_v2, %v1628_v62 }
0x1a58   :  { %v1385_v33 = vsel %vm1251_vm13, %v1384_v28, 0.0 }
0x1a59   :  { %v1307_v10 = vsel %vm1251_vm13, %v1306_v42, 0.0  ;;  %v1524_v42 = vld [vmem:[%s2335_s13 + $0x18] sm:$0xff] }
0x1a5a   :  { %1546 = vmatpush.msra.mxu1 %v1524_v42 }
0x1a74   :  { %v1254_v48 = vpop.xlane.xlu1 %1253 }
0x1a75   :  { %v1258_v7 = vadd.f32 %v1629_v46, %v1254_v48 }
0x1a7c   :  { %1282 = vadd.xlane.f32.xlu2 %v1281_v18 }
0x1a84   :  { %1334 = vadd.xlane.f32.xlu2 %v1333_v23 }
0x1a8c   :  { %1386 = vadd.xlane.f32.xlu2 %v1385_v33 }
0x1aad   :  { %v1211_v22 = vpop.permute.xlu2 %1210 }
0x1aae   :  { %v1213_v37 = vmul.f32 %v1211_v22, %v1208_v36 }
0x1ab0   :  { %v2288_v38 = vadd.f32 %v1214_v35, %v1213_v37 }
0x1ab2   :  { %1390 = vrot.lane.b32.xlu0 %v2288_v38, %s1773_s1 }
0x1adc   :  { %1308 = vadd.xlane.f32.xlu0 %v1307_v10  ;;  %v1523_v10 = vld [vmem:[%s2335_s13 + $0x10] sm:$0xff] }
0x1add   :  { %1547 = vmatpush.msra.mxu1 %v1523_v10 }
0x1aef   :  { %v1283_v44 = vpop.xlane.xlu2 %1282 }
0x1af0   :  { %v1284_v56 = vadd.f32 %v1629_v46, %v1283_v44 }
0x1af2   :  { %v1420_v32 = vmax.f32 %v1258_v7, %v1284_v56 }
0x1af7   :  { %v1335_v49 = vpop.xlane.xlu2 %1334 }
0x1af8   :  { %v1336_v51 = vadd.f32 %v1629_v46, %v1335_v49 }
0x1aff   :  { %v1387_v61 = vpop.xlane.xlu2 %1386 }
0x1b24   :  { %v1391_v11 = vpop.permute.xlu0 %1390 }
0x1b25   :  { %1613 = vmatmul.msk.f32.vlgmr.msra.gmra.mxu0 %vm108_vm5, %v1391_v11 }
0x1b4f   :  { %v1309_v47 = vpop.xlane.xlu0 %1308 }
0x1b50   :  { %v1310_v29 = vadd.f32 %v1629_v46, %v1309_v47 }
0x1b52   :  { %v1421_v50 = vmax.f32 %v1420_v32, %v1310_v29 }
0x1b54   :  { %v1422_v57 = vmax.f32 %v1421_v50, %v1336_v51 }
0x1ba2   :  { %v1411_v20 = vpop.f32.mrf.mxu0 }
0x1ba3   :  { %v1412_v13 = vadd.f32 %v1627_v53, %v1411_v20  ;;  %v1361_v53 = vpop.xlane.xlu1 %1360 }
0x1ba4   :  { %v1362_v60 = vadd.f32 %v1629_v46, %v1361_v53 }
0x1ba5   :  { %1727 = vtanh.f32 %v1412_v13  ;;  %v1522_v13 = vld [vmem:[%s2335_s13 + $0x8] sm:$0xff] }
0x1ba6   :  { %v1423_v58 = vmax.f32 %v1422_v57, %v1362_v60  ;;  %1548 = vmatpush.msra.mxu1 %v1522_v13 }
0x1bab   :  { %v1728_v52 = vpop.eup %1727 }
0x1bac   :  { %v1415_v15 = vmul.f32 %v1728_v52, %v1628_v62  ;;  %v1388_v62 = vadd.f32 %v1629_v46, %v1387_v61  ;;  %v1521_v52 = vld [vmem:[%s2335_s13] sm:$0xff] }
0x1bad   :  { %1549 = vmatpush.msra.mxu1 %v1521_v52 }
0x1bae   :  { %v1416_v43 = vsel %vm1251_vm13, %v1415_v15, 0.0  ;;  %v1424_v0 = vmax.f32 %v1423_v58, %v1388_v62 }
0x1baf   :  { %1417 = vadd.xlane.f32.xlu0 %v1416_v43 }
0x1c22   :  { %v1418_v59 = vpop.xlane.xlu0 %1417 }
0x1c23   :  { %v1419_v63 = vadd.f32 %v1629_v46, %v1418_v59 }
0x1c25   :  { %v1425_v1 = vmax.f32 %v1424_v0, %v1419_v63 }
0x1c27   :  { %v1432_v12 = vsub.f32 %v1310_v29, %v1425_v1  ;;  %v1429_v3 = vsub.f32 %v1284_v56, %v1425_v1  ;;  %v1426_v4 = vsub.f32 %v1258_v7, %v1425_v1  ;;  %v1435_v9 = vsub.f32 %v1336_v51, %v1425_v1 }
0x1c28   :  { %v1438_v14 = vsub.f32 %v1362_v60, %v1425_v1  ;;  %v1441_v27 = vsub.f32 %v1388_v62, %v1425_v1  ;;  %v1444_v30 = vsub.f32 %v1419_v63, %v1425_v1 }
0x1c29   :  { %v1433_v5 = vmul.f32 1.442695, %v1432_v12  ;;  %v1430_v6 = vmul.f32 1.442695, %v1429_v3  ;;  %v1427_v55 = vmul.f32 1.442695, %v1426_v4 }
0x1c2a   :  { %v1436_v26 = vmul.f32 1.442695, %v1435_v9  ;;  %v1439_v16 = vmul.f32 1.442695, %v1438_v14  ;;  %v1442_v18 = vmul.f32 1.442695, %v1441_v27 }
0x1c2b   :  { %1729 = vpow2.f32 %v1433_v5  ;;  %v1445_v23 = vmul.f32 1.442695, %v1444_v30 }
0x1c2c   :  { %1731 = vpow2.f32 %v1430_v6 }
0x1c2d   :  { %1733 = vpow2.f32 %v1427_v55 }
0x1c2e   :  { %1735 = vpow2.f32 %v1436_v26 }
0x1c2f   :  { %1737 = vpow2.f32 %v1439_v16 }
0x1c30   :  { %1739 = vpow2.f32 %v1442_v18 }
0x1c31   :  { %v1730_v17 = vpop.eup %1729  ;;  %1741 = vpow2.f32 %v1445_v23 }
0x1c32   :  { %v1732_v19 = vpop.eup %1731  ;;  %1468 = vperm.xlu1 %1622, %v1730_v17  }
0x1c33   :  { %v1734_v21 = vpop.eup %1733  ;;  %1461 = vperm.xlu0 %1621, %v1732_v19  }
0x1c34   :  { %1455 = vperm.xlu2 %1620, %v1734_v21   ;;  %v1447_v24 = vadd.f32 %v1734_v21, %v1732_v19  ;;  %v1736_v33 = vpop.eup %1735 }
0x1c35   :  { %v1738_v22 = vpop.eup %1737 }
0x1c36   :  { %v1448_v28 = vadd.f32 %v1730_v17, %v1447_v24  ;;  %v1740_v37 = vpop.eup %1739 }
0x1c37   :  { %v1742_v41 = vpop.eup %1741 }
0x1c38   :  { %v1449_v36 = vadd.f32 %v1736_v33, %v1448_v28 }
0x1c3a   :  { %v1450_v35 = vadd.f32 %v1738_v22, %v1449_v36 }
0x1c3c   :  { %1475 = vperm.xlu2 %1620, %v1736_v33   ;;  %v1451_v39 = vadd.f32 %v1740_v37, %v1450_v35 }
0x1c3e   :  { %v1452_v2 = vadd.f32 %v1742_v41, %v1451_v39 }
0x1c40   :  { %1503 = vperm.xlu1 %1622, %v1452_v2  }
0x1c44   :  { %1489 = vperm.xlu2 %1620, %v1740_v37  }
0x1c48   :  { %1482 = vperm.xlu1 %1622, %v1738_v22  }
0x1c50   :  { %1496 = vperm.xlu1 %1622, %v1742_v41  }
0x1c8e   :  { %v1456_v11 = vpop.permute.xlu2 %1455 }
0x1c8f   :  { %v1458_v45 = vmul.f32 %v1456_v11, %v2110_v8 }
0x1c96   :  { %v1476_v46 = vpop.permute.xlu2 %1475 }
0x1c97   :  { %v1478_v32 = vmul.f32 %v1476_v46, %v2210_v54 }
0x1c9e   :  { %v1490_v57 = vpop.permute.xlu2 %1489 }
0x1c9f   :  { %v1492_v58 = vmul.f32 %v1490_v57, %v2256_v40  ;;  %v1630_v40 = vld [vmem:[%s2336_s14] ss:$0 sm:$0xff] }
0x1ca4   :  { %v1469_v20 = vpop.permute.xlu1 %1468 }
0x1ca5   :  { %v1462_v15 = vpop.permute.xlu0 %1461  ;;  %v1471_v47 = vmul.f32 %v1469_v20, %v2192_v31 }
0x1ca6   :  { %v1464_v43 = vmul.f32 %v1462_v15, %v2174_v25 }
0x1ca8   :  { %v1465_v48 = vadd.f32 %v1464_v43, %v1458_v45 }
0x1caa   :  { %v1472_v7 = vadd.f32 %v1471_v47, %v1465_v48 }
0x1cac   :  { %v1479_v53 = vadd.f32 %v1478_v32, %v1472_v7 }
0x1cb2   :  { %v1504_v44 = vpop.permute.xlu1 %1503 }
0x1cb3   :  { %1743 = vrcp.f32 %v1504_v44  ;;  %v1517_v8 = vand.u32 2147483648, %v1504_v44  ;;  %vm1511_vm15 = vweird.f32 %v1504_v44  ;;  %v1515_v31 = vand.u32 2147483647, %v1504_v44 }
0x1cb5   :  { %v1518_v0 = vor.u32 1.1754944e-38, %v1517_v8  ;;  %vm1516_vm2 = vcmp.eq.f32.partialorder %v1515_v31, 8.507059e+37 }
0x1cb9   :  { %v1744_v56 = vpop.eup %1743 }
0x1cba   :  { %v1507_v29 = vmul.f32 %v1744_v56, %v1504_v44  ;;  %v1483_v49 = vpop.permute.xlu1 %1482  ;;  %vm1512_vm14 = vweird.f32 %v1744_v56 }
0x1cbb   :  { %v1485_v50 = vmul.f32 %v1483_v49, %v2231_v34  ;;  %vm1513_vm1 = vmor %vm1511_vm15, %vm1512_vm14 }
0x1cbc   :  { %v1508_v51 = vsub.f32 1.0, %v1507_v29 }
0x1cbd   :  { %v1486_v60 = vadd.f32 %v1485_v50, %v1479_v53 }
0x1cbe   :  { %v1509_v25 = vmul.f32 %v1744_v56, %v1508_v51 }
0x1cbf   :  { %v1493_v59 = vadd.f32 %v1492_v58, %v1486_v60 }
0x1cc0   :  { %v1510_v61 = vadd.f32 %v1744_v56, %v1509_v25 }
0x1cc2   :  { %v1497_v62 = vpop.permute.xlu1 %1496  ;;  %v1514_v54 = vsel %vm1513_vm1, %v1744_v56, %v1510_v61 }
0x1cc3   :  { %v1499_v63 = vmul.f32 %v1497_v62, %v2288_v38  ;;  %v1519_v1 = vsel %vm1516_vm2, %v1518_v0, %v1514_v54 }
0x1cc5   :  { %v1500_v34 = vadd.f32 %v1499_v63, %v1493_v59 }
0x1cc7   :  { %v1520_v12 = vmul.f32 %v1519_v1, %v1500_v34 }
0x1cc9   :  { %1530 = vrot.lane.b32.xlu2 %v1520_v12, %s1773_s1 }
0x1d23   :  { %v1531_v3 = vpop.permute.xlu2 %1530 }
0x1d24   :  { %1614 = vmatmul.msk.f32.vlgmr.msra.gmra.mxu1 %vm108_vm5, %v1531_v3 }
0x1da1   :  { %v1551_v38 = vpop.f32.mrf.mxu1 }
0x1da2   :  { %v1552_v4 = vadd.f32 %v1630_v40, %v1551_v38 }
0x1da4   :  { %1555 = vst.msk [vmem:[#allocation3] sm:$0x3] %vm1554_vm0, %v1552_v4 }
0x1da5   :  { %1566 = dma.vmem_to_hbm [thread:$0]  %s1562_s3, 32, %s1564_s7, [#allocation4]  }
0x1da6   :  { %1769 = dma.done.wait [#allocation4], 32  }
0x1da7   :  { %1770 = vsyncadd [#allocation4], 4294967264 }
0x1da8   :  { %1571 = vsyncpa [#allocation4], 1 }

</bundles_post_ra>
